<compile_context>
chip_gen: v7x
topology: tpu7x:2x2x1
jax: 0.10.0
libtpu: 0.0.40
codegen_flags: <defaults>
</compile_context>

<pallas_src>
import math
from functools import partial

import jax
import jax.numpy as jnp
from jax.experimental import pallas as pl
from jax.experimental.pallas import tpu as pltpu


# ----------------------------- config ---------------------------------------
class Cfg:
    vocab = 64
    d_model = 32
    num_heads = 2
    num_layers = 2
    ffn = 64
    max_len = 8          # tokens per post
    max_post = 2         # posts per sample
    max_node = 3         # nodes per sample (word-concept groups)
    max_idx_num = 4      # word ids per node
    pad = 0
    ln_eps = 1e-12


# ----------------------------- kernel helpers --------------------------------
def _ln(x, g, b, eps):
    mu = jnp.mean(x, axis=-1, keepdims=True)
    var = jnp.mean(jnp.square(x - mu), axis=-1, keepdims=True)
    return (x - mu) * jax.lax.rsqrt(var + eps) * g + b


# ----------------------------- fused encoder layer ----------------------------
def _fused_layer_kernel(x_ref, bias_ref,
                        qkv_w_ref, qkv_b_ref, o_w_ref, o_b_ref,
                        ln1_g_ref, ln1_b_ref,
                        ff1_w_ref, ff1_b_ref, ff2_w_ref, ff2_b_ref,
                        ln2_g_ref, ln2_b_ref,
                        o_ref, *, num_heads, head_dim, eps):
    x = x_ref[0]                                   # (S, d) f32
    bias = bias_ref[0]                             # (1, S) additive mask
    d = num_heads * head_dim
    scale = 1.0 / math.sqrt(head_dim)

    # ---- fused QKV projection: one (S, d) x (d, 3d) bf16 MXU pass ----
    xb = x.astype(jnp.bfloat16)
    qkv = jnp.dot(xb, qkv_w_ref[...], preferred_element_type=jnp.float32)
    qkv = qkv + qkv_b_ref[...]                     # (S, 3d) f32

    # ---- per-head attention + out-projection, heads via static lane slices ----
    o_w = o_w_ref[...]                             # (d, d) bf16
    attn_out = None
    for h in range(num_heads):
        lo = h * head_dim
        qh = qkv[:, lo:lo + head_dim]              # (S, dh)
        kh = qkv[:, d + lo:d + lo + head_dim]      # (S, dh)
        vh = qkv[:, 2 * d + lo:2 * d + lo + head_dim]

        s = jax.lax.dot_general(
            qh.astype(jnp.bfloat16), kh.astype(jnp.bfloat16),
            (((1,), (1,)), ((), ())),
            preferred_element_type=jnp.float32) * scale + bias        # (S, S)
        s = s - jnp.max(s, axis=-1, keepdims=True)
        p = jnp.exp(s)
        p = p * pl.reciprocal(jnp.sum(p, axis=-1, keepdims=True), approx=True)

        ctx_h = jnp.dot(p.astype(jnp.bfloat16), vh.astype(jnp.bfloat16),
                        preferred_element_type=jnp.float32)           # (S, dh)
        # fold the output projection per head (== concat(heads) @ o_w)
        contrib = jnp.dot(ctx_h.astype(jnp.bfloat16),
                          o_w[lo:lo + head_dim, :],
                          preferred_element_type=jnp.float32)         # (S, d)
        attn_out = contrib if attn_out is None else attn_out + contrib
    attn_out = attn_out + o_b_ref[...]

    # ---- residual + LN1 ----
    h1 = _ln(attn_out + x, ln1_g_ref[...], ln1_b_ref[...], eps)

    # ---- FFN (gelu) + residual + LN2 ----
    # TODO(synk): HF BERT default is erf-gelu; tanh-approx gelu used here.
    ff = jnp.dot(h1.astype(jnp.bfloat16), ff1_w_ref[...],
                 preferred_element_type=jnp.float32) + ff1_b_ref[...]
    ff = jax.nn.gelu(ff, approximate=True)
    ff2 = jnp.dot(ff.astype(jnp.bfloat16), ff2_w_ref[...],
                  preferred_element_type=jnp.float32) + ff2_b_ref[...]
    o_ref[0] = _ln(ff2 + h1, ln2_g_ref[...], ln2_b_ref[...], eps)


def encoder_layer_fused(x, bias, lp, cfg: Cfg):
    """x: (B, S, d) f32, bias: (B, 1, S) additive. One pallas_call per layer."""
    B, S, d = x.shape
    f = cfg.ffn
    H = cfg.num_heads
    dh = d // H

    def w_spec(shape):
        return pl.BlockSpec(shape, lambda b: (0, 0))

    return pl.pallas_call(
        partial(_fused_layer_kernel, num_heads=H, head_dim=dh, eps=cfg.ln_eps),
        out_shape=jax.ShapeDtypeStruct((B, S, d), jnp.float32),
        grid=(B,),
        in_specs=[
            pl.BlockSpec((1, S, d), lambda b: (b, 0, 0)),   # x
            pl.BlockSpec((1, 1, S), lambda b: (b, 0, 0)),   # bias
            w_spec((d, 3 * d)), w_spec((1, 3 * d)),          # qkv
            w_spec((d, d)), w_spec((1, d)),                  # out proj
            w_spec((1, d)), w_spec((1, d)),                  # ln1
            w_spec((d, f)), w_spec((1, f)),                  # ff1
            w_spec((f, d)), w_spec((1, d)),                  # ff2
            w_spec((1, d)), w_spec((1, d)),                  # ln2
        ],
        out_specs=pl.BlockSpec((1, S, d), lambda b: (b, 0, 0)),
        compiler_params=pltpu.CompilerParams(dimension_semantics=("parallel",)),
    )(x, bias,
      lp["qkv_w"], lp["qkv_b"], lp["o_w"], lp["o_b"],
      lp["ln1_g"], lp["ln1_b"],
      lp["ff1_w"], lp["ff1_b"], lp["ff2_w"], lp["ff2_b"],
      lp["ln2_g"], lp["ln2_b"])


# ----------------------------- embeddings + LN --------------------------------
def _embed_ln_kernel(we_ref, pos_ref, type_ref, g_ref, b_ref, o_ref, *, eps):
    x = we_ref[0] + pos_ref[0] + type_ref[0]       # (S, d)
    o_ref[0] = _ln(x, g_ref[0], b_ref[0], eps)


def embed_layernorm(word_emb, pos_emb, type_vec, gamma, beta, cfg: Cfg):
    """word_emb: (B, S, d) gathered word embeddings -> LN(word + pos + type)."""
    B, S, d = word_emb.shape
    pos = pos_emb[None, :S, :]
    typ = type_vec.reshape(1, 1, d)
    g = gamma.reshape(1, 1, d)
    b = beta.reshape(1, 1, d)
    return pl.pallas_call(
        partial(_embed_ln_kernel, eps=cfg.ln_eps),
        out_shape=jax.ShapeDtypeStruct((B, S, d), jnp.float32),
        grid=(B,),
        in_specs=[
            pl.BlockSpec((1, S, d), lambda i: (i, 0, 0)),
            pl.BlockSpec((1, S, d), lambda i: (0, 0, 0)),
            pl.BlockSpec((1, 1, d), lambda i: (0, 0, 0)),
            pl.BlockSpec((1, 1, d), lambda i: (0, 0, 0)),
            pl.BlockSpec((1, 1, d), lambda i: (0, 0, 0)),
        ],
        out_specs=pl.BlockSpec((1, S, d), lambda i: (i, 0, 0)),
        compiler_params=pltpu.CompilerParams(dimension_semantics=("parallel",)),
    )(word_emb, pos, typ, g, b)


# ----------------------------- pooler ----------------------------------------
def _pooler_kernel(x_ref, w_ref, b_ref, o_ref):
    y = jnp.dot(x_ref[...].astype(jnp.bfloat16), w_ref[...],
                preferred_element_type=jnp.float32) + b_ref[...]
    o_ref[...] = jnp.tanh(y)


def pooler(cls, w_bf16, b2):
    B, d = cls.shape
    return pl.pallas_call(
        _pooler_kernel,
        out_shape=jax.ShapeDtypeStruct((B, d), jnp.float32),
        grid=(1,),
        in_specs=[pl.BlockSpec((B, d), lambda i: (0, 0)),
                  pl.BlockSpec((d, d), lambda i: (0, 0)),
                  pl.BlockSpec((1, d), lambda i: (0, 0))],
        out_specs=pl.BlockSpec((B, d), lambda i: (0, 0)),
    )(cls, w_bf16, b2)


# ----------------------------- word-concept masked mean -----------------------
def _wc_mean_kernel(ids_ref, emb_ref, o_ref, *, pad):
    ids = ids_ref[...]                              # (N, I) int32
    emb = emb_ref[...]                              # (N, I, D) f32
    m = (ids != pad).astype(jnp.float32)            # (N, I)
    s = jnp.sum(emb * m[:, :, None], axis=1)        # (N, D) VPU/XLU reduction
    num = jnp.sum(m, axis=-1, keepdims=True)        # (N, 1)
    o_ref[...] = s * pl.reciprocal(num + 1e-8, approx=True)


def wc_masked_mean(wc_ids_flat, wc_emb_gathered, pad):
    """wc_ids_flat:(N,I) int32, wc_emb_gathered:(N,I,D) f32 -> (N,D).  One step."""
    N, I = wc_ids_flat.shape
    D = wc_emb_gathered.shape[-1]
    return pl.pallas_call(
        partial(_wc_mean_kernel, pad=pad),
        out_shape=jax.ShapeDtypeStruct((N, D), jnp.float32),
        grid=(1,),
        in_specs=[pl.BlockSpec((N, I), lambda i: (0, 0)),
                  pl.BlockSpec((N, I, D), lambda i: (0, 0, 0))],
        out_specs=pl.BlockSpec((N, D), lambda i: (0, 0)),
    )(wc_ids_flat, wc_emb_gathered)


# ----------------------------- model glue ------------------------------------
def init_params(key, cfg: Cfg):
    kit = iter(jax.random.split(key, 256))
    nrm = lambda shape: 0.02 * jax.random.normal(next(kit), shape, jnp.float32)
    d, f, v = cfg.d_model, cfg.ffn, cfg.vocab
    params = dict(
        word_emb=nrm((v, d)),
        pos_emb=nrm((cfg.max_len, d)),
        type_emb=nrm((2, d)),
        emb_ln_g=jnp.ones((d,), jnp.float32),
        emb_ln_b=jnp.zeros((d,), jnp.float32),
        pooler_w=nrm((d, d)),
        pooler_b=jnp.zeros((d,), jnp.float32),
        layers=[],
    )
    for _ in range(cfg.num_layers):
        params["layers"].append(dict(
            q_w=nrm((d, d)), q_b=jnp.zeros((d,), jnp.float32),
            k_w=nrm((d, d)), k_b=jnp.zeros((d,), jnp.float32),
            v_w=nrm((d, d)), v_b=jnp.zeros((d,), jnp.float32),
            o_w=nrm((d, d)), o_b=jnp.zeros((d,), jnp.float32),
            ln1_g=jnp.ones((d,), jnp.float32), ln1_b=jnp.zeros((d,), jnp.float32),
            ff1_w=nrm((d, f)), ff1_b=jnp.zeros((f,), jnp.float32),
            ff2_w=nrm((f, d)), ff2_b=jnp.zeros((d,), jnp.float32),
            ln2_g=jnp.ones((d,), jnp.float32), ln2_b=jnp.zeros((d,), jnp.float32),
        ))
    return params


def _prep_layer(p, d):
    """Fuse QKV weights, pre-cast matmul weights to bf16, reshape biases/LN to (1, N)."""
    return dict(
        qkv_w=jnp.concatenate([p["q_w"], p["k_w"], p["v_w"]], axis=1).astype(jnp.bfloat16),
        qkv_b=jnp.concatenate([p["q_b"], p["k_b"], p["v_b"]]).reshape(1, 3 * d),
        o_w=p["o_w"].astype(jnp.bfloat16), o_b=p["o_b"].reshape(1, d),
        ln1_g=p["ln1_g"].reshape(1, d), ln1_b=p["ln1_b"].reshape(1, d),
        ff1_w=p["ff1_w"].astype(jnp.bfloat16), ff1_b=p["ff1_b"].reshape(1, -1),
        ff2_w=p["ff2_w"].astype(jnp.bfloat16), ff2_b=p["ff2_b"].reshape(1, d),
        ln2_g=p["ln2_g"].reshape(1, d), ln2_b=p["ln2_b"].reshape(1, d),
    )


def bert_forward(params, posts_ids, attn_mask, wc_ids, cfg: Cfg):
    """Mirrors BERT.forward of the PyTorch module."""
    bsz, max_post, max_len = posts_ids.shape
    _, max_node, max_idx_num = wc_ids.shape
    d = cfg.d_model

    ids = posts_ids.reshape(bsz * max_post, max_len)
    mask = attn_mask.reshape(bsz * max_post, max_len).astype(jnp.float32)
    B, S = ids.shape

    # ---- embeddings (gather in JAX; add + LayerNorm fused in Pallas) ----
    # TODO(synk): token_type_ids assumed all-zero (single segment), as in the reference call.
    we = params["word_emb"]
    word = jnp.take(we, ids, axis=0)                              # (B, S, d)
    x = embed_layernorm(word, params["pos_emb"], params["type_emb"][0],
                        params["emb_ln_g"], params["emb_ln_b"], cfg)

    hidden_states = [x]                                           # encoder_outputs[2]
    bias = ((1.0 - mask) * -10000.0)[:, None, :]                  # (B, 1, S)

    layer_params = [_prep_layer(p, d) for p in params["layers"]]
    for lp in layer_params:
        x = encoder_layer_fused(x, bias, lp, cfg)
        hidden_states.append(x)

    # ---- pooler (encoder_outputs[1]) ----
    cls = x[:, 0, :]                                              # (B, d)
    pooled = pooler(cls, params["pooler_w"].astype(jnp.bfloat16),
                    params["pooler_b"].reshape(1, d))
    last_sematic_rep = pooled.reshape(bsz, max_post, d)

    # ---- word-concept masked-mean embedding (single Pallas step) ----
    wc_flat = wc_ids.reshape(-1, max_idx_num)                     # (bsz*max_node, I)
    wc_gathered = jnp.take(we, wc_flat, axis=0)                   # (bsz*max_node, I, d)
    wc_emb = wc_masked_mean(wc_flat, wc_gathered, cfg.pad)
    wc_emb = wc_emb.reshape(bsz, max_node, d)

    layers_nodes_emb = []
    for h in hidden_states:
        cls_h = h[:, 0, :].reshape(bsz, max_post, d)
        layers_nodes_emb.append(jnp.concatenate([cls_h, wc_emb], axis=-2))

    return last_sematic_rep, layers_nodes_emb


# ----------------------------- main ------------------------------------------
if __name__ == "__main__":
    cfg = Cfg()
    key = jax.random.PRNGKey(0)
    k_par, k_ids, k_len, k_wc = jax.random.split(key, 4)

    params = init_params(k_par, cfg)

    bsz = 2
    posts_ids = jax.random.randint(
        k_ids, (bsz, cfg.max_post, cfg.max_len), 1, cfg.vocab, dtype=jnp.int32)
    lengths = jax.random.randint(
        k_len, (bsz, cfg.max_post), 4, cfg.max_len + 1, dtype=jnp.int32)
    attn_mask = (jnp.arange(cfg.max_len)[None, None, :]
                 < lengths[:, :, None]).astype(jnp.int32)
    wc_ids = jax.random.randint(
        k_wc, (bsz, cfg.max_node, cfg.max_idx_num), 0, cfg.vocab, dtype=jnp.int32)
    # guarantee at least one non-pad id per node
    wc_ids = wc_ids.at[:, :, 0].set(jnp.maximum(wc_ids[:, :, 0], 1))

    fwd = jax.jit(partial(bert_forward, cfg=cfg))
    last_sematic_rep, layers_nodes_emb = fwd(params, posts_ids, attn_mask, wc_ids)
    jax.block_until_ready((last_sematic_rep, layers_nodes_emb))

    assert last_sematic_rep.shape == (bsz, cfg.max_post, cfg.d_model)
    assert len(layers_nodes_emb) == cfg.num_layers + 1
    for t in layers_nodes_emb:
        assert t.shape == (bsz, cfg.max_post + cfg.max_node, cfg.d_model)

    print("KERNEL_OK")
</pallas_src>

<mosaic_0001>
module attributes {stable_mosaic.version = 11 : i64} {
  func.func @_embed_ln_kernel(%arg0: i32, %arg1: memref<1x8x32xf32, #tpu.memory_space<vmem>>, %arg2: memref<1x8x32xf32, #tpu.memory_space<vmem>>, %arg3: memref<1x1x32xf32, #tpu.memory_space<vmem>>, %arg4: memref<1x1x32xf32, #tpu.memory_space<vmem>>, %arg5: memref<1x1x32xf32, #tpu.memory_space<vmem>>, %arg6: memref<1x8x32xf32, #tpu.memory_space<vmem>>) attributes {dimension_semantics = [#tpu.dimension_semantics<parallel>], iteration_bounds = array<i64: 4>, scalar_prefetch = 0 : i64, scratch_operands = 0 : i64, tpu.core_type = #tpu.core_type<tc>, window_params = [{transform_indices = @transform_0, window_bounds = array<i64: 1, 8, 32>}, {pipeline_mode = #tpu.pipeline_mode<synchronous>, transform_indices = @transform_1, window_bounds = array<i64: 1, 8, 32>}, {pipeline_mode = #tpu.pipeline_mode<synchronous>, transform_indices = @transform_2, window_bounds = array<i64: 1, 1, 32>}, {pipeline_mode = #tpu.pipeline_mode<synchronous>, transform_indices = @transform_3, window_bounds = array<i64: 1, 1, 32>}, {pipeline_mode = #tpu.pipeline_mode<synchronous>, transform_indices = @transform_4, window_bounds = array<i64: 1, 1, 32>}, {transform_indices = @transform_5, window_bounds = array<i64: 1, 8, 32>}]} {
    %c0 = arith.constant 0 : index
    %c0_0 = arith.constant 0 : index
    %c0_1 = arith.constant 0 : index
    %0 = vector.load %arg1[%c0, %c0_0, %c0_1] : memref<1x8x32xf32, #tpu.memory_space<vmem>>, vector<1x8x32xf32>
    %1 = vector.shape_cast %0 : vector<1x8x32xf32> to vector<8x32xf32>
    %c0_2 = arith.constant 0 : index
    %c0_3 = arith.constant 0 : index
    %c0_4 = arith.constant 0 : index
    %2 = vector.load %arg2[%c0_2, %c0_3, %c0_4] : memref<1x8x32xf32, #tpu.memory_space<vmem>>, vector<1x8x32xf32>
    %3 = vector.shape_cast %2 : vector<1x8x32xf32> to vector<8x32xf32>
    %4 = arith.addf %1, %3 : vector<8x32xf32>
    %c0_5 = arith.constant 0 : index
    %c0_6 = arith.constant 0 : index
    %c0_7 = arith.constant 0 : index
    %5 = vector.load %arg3[%c0_5, %c0_6, %c0_7] : memref<1x1x32xf32, #tpu.memory_space<vmem>>, vector<1x1x32xf32>
    %6 = vector.shape_cast %5 : vector<1x1x32xf32> to vector<1x32xf32>
    %7 = vector.broadcast %6 : vector<1x32xf32> to vector<8x32xf32>
    %8 = arith.addf %4, %7 : vector<8x32xf32>
    %c0_8 = arith.constant 0 : index
    %c0_9 = arith.constant 0 : index
    %c0_10 = arith.constant 0 : index
    %9 = vector.load %arg4[%c0_8, %c0_9, %c0_10] : memref<1x1x32xf32, #tpu.memory_space<vmem>>, vector<1x1x32xf32>
    %10 = vector.shape_cast %9 : vector<1x1x32xf32> to vector<1x32xf32>
    %c0_11 = arith.constant 0 : index
    %c0_12 = arith.constant 0 : index
    %c0_13 = arith.constant 0 : index
    %11 = vector.load %arg5[%c0_11, %c0_12, %c0_13] : memref<1x1x32xf32, #tpu.memory_space<vmem>>, vector<1x1x32xf32>
    %12 = vector.shape_cast %11 : vector<1x1x32xf32> to vector<1x32xf32>
    %cst = arith.constant dense<0.000000e+00> : vector<8xf32>
    %13 = vector.multi_reduction <add>, %8, %cst [1] : vector<8x32xf32> to vector<8xf32>
    %14 = vector.shape_cast %13 : vector<8xf32> to vector<8x1xf32>
    %cst_14 = arith.constant 3.200000e+01 : f32
    %15 = vector.broadcast %cst_14 : f32 to vector<8x1xf32>
    %16 = arith.divf %14, %15 : vector<8x1xf32>
    %17 = vector.broadcast %16 : vector<8x1xf32> to vector<8x32xf32>
    %18 = arith.subf %8, %17 : vector<8x32xf32>
    %19 = arith.mulf %18, %18 : vector<8x32xf32>
    %cst_15 = arith.constant dense<0.000000e+00> : vector<8xf32>
    %20 = vector.multi_reduction <add>, %19, %cst_15 [1] : vector<8x32xf32> to vector<8xf32>
    %21 = vector.shape_cast %20 : vector<8xf32> to vector<8x1xf32>
    %cst_16 = arith.constant 3.200000e+01 : f32
    %22 = vector.broadcast %cst_16 : f32 to vector<8x1xf32>
    %23 = arith.divf %21, %22 : vector<8x1xf32>
    %24 = vector.broadcast %16 : vector<8x1xf32> to vector<8x32xf32>
    %25 = arith.subf %8, %24 : vector<8x32xf32>
    %cst_17 = arith.constant 9.99999996E-13 : f32
    %26 = vector.broadcast %cst_17 : f32 to vector<8x1xf32>
    %27 = arith.addf %23, %26 : vector<8x1xf32>
    %28 = math.rsqrt %27 : vector<8x1xf32>
    %29 = vector.broadcast %28 : vector<8x1xf32> to vector<8x32xf32>
    %30 = arith.mulf %25, %29 : vector<8x32xf32>
    %31 = vector.broadcast %10 : vector<1x32xf32> to vector<8x32xf32>
    %32 = arith.mulf %30, %31 : vector<8x32xf32>
    %33 = vector.broadcast %12 : vector<1x32xf32> to vector<8x32xf32>
    %34 = arith.addf %32, %33 : vector<8x32xf32>
    %c0_18 = arith.constant 0 : index
    %c0_19 = arith.constant 0 : index
    %c0_20 = arith.constant 0 : index
    %35 = vector.load %arg6[%c0_18, %c0_19, %c0_20] : memref<1x8x32xf32, #tpu.memory_space<vmem>>, vector<1x8x32xf32>
    %36 = vector.shape_cast %35 : vector<1x8x32xf32> to vector<8x32xf32>
    %37 = vector.shape_cast %34 : vector<8x32xf32> to vector<1x8x32xf32>
    tpu.vector_store %arg6[%c0_18, %c0_19, %c0_20], %37 {strides = array<i32>} : memref<1x8x32xf32, #tpu.memory_space<vmem>>, vector<1x8x32xf32>,
    return
  }
  func.func @transform_0(%arg0: i32) -> (i32, i32, i32) {
    %c0_i32 = arith.constant 0 : i32
    %c0_i32_0 = arith.constant 0 : i32
    %c0_i32_1 = arith.constant 0 : i32
    return %arg0, %c0_i32, %c0_i32_0 : i32, i32, i32
  }
  func.func @transform_1(%arg0: i32) -> (i32, i32, i32) {
    %c0_i32 = arith.constant 0 : i32
    %c0_i32_0 = arith.constant 0 : i32
    %c0_i32_1 = arith.constant 0 : i32
    %c0_i32_2 = arith.constant 0 : i32
    return %c0_i32, %c0_i32_0, %c0_i32_1 : i32, i32, i32
  }
  func.func @transform_2(%arg0: i32) -> (i32, i32, i32) {
    %c0_i32 = arith.constant 0 : i32
    %c0_i32_0 = arith.constant 0 : i32
    %c0_i32_1 = arith.constant 0 : i32
    %c0_i32_2 = arith.constant 0 : i32
    return %c0_i32, %c0_i32_0, %c0_i32_1 : i32, i32, i32
  }
  func.func @transform_3(%arg0: i32) -> (i32, i32, i32) {
    %c0_i32 = arith.constant 0 : i32
    %c0_i32_0 = arith.constant 0 : i32
    %c0_i32_1 = arith.constant 0 : i32
    %c0_i32_2 = arith.constant 0 : i32
    return %c0_i32, %c0_i32_0, %c0_i32_1 : i32, i32, i32
  }
  func.func @transform_4(%arg0: i32) -> (i32, i32, i32) {
    %c0_i32 = arith.constant 0 : i32
    %c0_i32_0 = arith.constant 0 : i32
    %c0_i32_1 = arith.constant 0 : i32
    %c0_i32_2 = arith.constant 0 : i32
    return %c0_i32, %c0_i32_0, %c0_i32_1 : i32, i32, i32
  }
  func.func @transform_5(%arg0: i32) -> (i32, i32, i32) {
    %c0_i32 = arith.constant 0 : i32
    %c0_i32_0 = arith.constant 0 : i32
    %c0_i32_1 = arith.constant 0 : i32
    return %arg0, %c0_i32, %c0_i32_0 : i32, i32, i32
  }
}

module attributes {stable_mosaic.version = 11 : i64} {
  func.func @_fused_layer_kernel(%arg0: i32, %arg1: memref<1x8x32xf32, #tpu.memory_space<vmem>>, %arg2: memref<1x1x8xf32, #tpu.memory_space<vmem>>, %arg3: memref<32x96xbf16, #tpu.memory_space<vmem>>, %arg4: memref<1x96xf32, #tpu.memory_space<vmem>>, %arg5: memref<32x32xbf16, #tpu.memory_space<vmem>>, %arg6: memref<1x32xf32, #tpu.memory_space<vmem>>, %arg7: memref<1x32xf32, #tpu.memory_space<vmem>>, %arg8: memref<1x32xf32, #tpu.memory_space<vmem>>, %arg9: memref<32x64xbf16, #tpu.memory_space<vmem>>, %arg10: memref<1x64xf32, #tpu.memory_space<vmem>>, %arg11: memref<64x32xbf16, #tpu.memory_space<vmem>>, %arg12: memref<1x32xf32, #tpu.memory_space<vmem>>, %arg13: memref<1x32xf32, #tpu.memory_space<vmem>>, %arg14: memref<1x32xf32, #tpu.memory_space<vmem>>, %arg15: memref<1x8x32xf32, #tpu.memory_space<vmem>>) attributes {dimension_semantics = [#tpu.dimension_semantics<parallel>], iteration_bounds = array<i64: 4>, scalar_prefetch = 0 : i64, scratch_operands = 0 : i64, tpu.core_type = #tpu.core_type<tc>, window_params = [{transform_indices = @transform_0, window_bounds = array<i64: 1, 8, 32>}, {transform_indices = @transform_1, window_bounds = array<i64: 1, 1, 8>}, {pipeline_mode = #tpu.pipeline_mode<synchronous>, transform_indices = @transform_2, window_bounds = array<i64: 32, 96>}, {pipeline_mode = #tpu.pipeline_mode<synchronous>, transform_indices = @transform_3, window_bounds = array<i64: 1, 96>}, {pipeline_mode = #tpu.pipeline_mode<synchronous>, transform_indices = @transform_4, window_bounds = array<i64: 32, 32>}, {pipeline_mode = #tpu.pipeline_mode<synchronous>, transform_indices = @transform_5, window_bounds = array<i64: 1, 32>}, {pipeline_mode = #tpu.pipeline_mode<synchronous>, transform_indices = @transform_6, window_bounds = array<i64: 1, 32>}, {pipeline_mode = #tpu.pipeline_mode<synchronous>, transform_indices = @transform_7, window_bounds = array<i64: 1, 32>}, {pipeline_mode = #tpu.pipeline_mode<synchronous>, transform_indices = @transform_8, window_bounds = array<i64: 32, 64>}, {pipeline_mode = #tpu.pipeline_mode<synchronous>, transform_indices = @transform_9, window_bounds = array<i64: 1, 64>}, {pipeline_mode = #tpu.pipeline_mode<synchronous>, transform_indices = @transform_10, window_bounds = array<i64: 64, 32>}, {pipeline_mode = #tpu.pipeline_mode<synchronous>, transform_indices = @transform_11, window_bounds = array<i64: 1, 32>}, {pipeline_mode = #tpu.pipeline_mode<synchronous>, transform_indices = @transform_12, window_bounds = array<i64: 1, 32>}, {pipeline_mode = #tpu.pipeline_mode<synchronous>, transform_indices = @transform_13, window_bounds = array<i64: 1, 32>}, {transform_indices = @transform_14, window_bounds = array<i64: 1, 8, 32>}]} {
    %c0 = arith.constant 0 : index
    %c0_0 = arith.constant 0 : index
    %c0_1 = arith.constant 0 : index
    %0 = vector.load %arg1[%c0, %c0_0, %c0_1] : memref<1x8x32xf32, #tpu.memory_space<vmem>>, vector<1x8x32xf32>
    %1 = vector.shape_cast %0 : vector<1x8x32xf32> to vector<8x32xf32>
    %c0_2 = arith.constant 0 : index
    %c0_3 = arith.constant 0 : index
    %c0_4 = arith.constant 0 : index
    %2 = vector.load %arg2[%c0_2, %c0_3, %c0_4] : memref<1x1x8xf32, #tpu.memory_space<vmem>>, vector<1x1x8xf32>
    %3 = vector.shape_cast %2 : vector<1x1x8xf32> to vector<1x8xf32>
    %4 = arith.truncf %1 : vector<8x32xf32> to vector<8x32xbf16>
    %c0_5 = arith.constant 0 : index
    %c0_6 = arith.constant 0 : index
    %5 = vector.load %arg3[%c0_5, %c0_6] : memref<32x96xbf16, #tpu.memory_space<vmem>>, vector<32x96xbf16>
    %cst = arith.constant dense<0.000000e+00> : vector<8x96xf32>
    %6 = tpu.matmul %4, %5, %cst {dimension_numbers = #tpu.dot_dimension_numbers<[1], [0], [0], [1], [0, 0, 1, 1], [], []>} : vector<8x32xbf16>, vector<32x96xbf16>, vector<8x96xf32> -> vector<8x96xf32>
    %c0_7 = arith.constant 0 : index
    %c0_8 = arith.constant 0 : index
    %7 = vector.load %arg4[%c0_7, %c0_8] : memref<1x96xf32, #tpu.memory_space<vmem>>, vector<1x96xf32>
    %8 = vector.broadcast %7 : vector<1x96xf32> to vector<8x96xf32>
    %9 = arith.addf %6, %8 : vector<8x96xf32>
    %c0_9 = arith.constant 0 : index
    %c0_10 = arith.constant 0 : index
    %10 = vector.load %arg5[%c0_9, %c0_10] : memref<32x32xbf16, #tpu.memory_space<vmem>>, vector<32x32xbf16>
    %11 = vector.extract_strided_slice %9 {offsets = [0, 0], sizes = [8, 16], strides = [1, 1]} : vector<8x96xf32> to vector<8x16xf32>
    %12 = vector.extract_strided_slice %9 {offsets = [0, 32], sizes = [8, 16], strides = [1, 1]} : vector<8x96xf32> to vector<8x16xf32>
    %13 = vector.extract_strided_slice %9 {offsets = [0, 64], sizes = [8, 16], strides = [1, 1]} : vector<8x96xf32> to vector<8x16xf32>
    %14 = arith.truncf %11 : vector<8x16xf32> to vector<8x16xbf16>
    %15 = arith.truncf %12 : vector<8x16xf32> to vector<8x16xbf16>
    %cst_11 = arith.constant dense<0.000000e+00> : vector<8x8xf32>
    %16 = tpu.matmul %14, %15, %cst_11 {dimension_numbers = #tpu.dot_dimension_numbers<[1], [1], [0], [0], [0, 0, 1, 0], [], []>} : vector<8x16xbf16>, vector<8x16xbf16>, vector<8x8xf32> -> vector<8x8xf32>
    %cst_12 = arith.constant 2.500000e-01 : f32
    %17 = vector.broadcast %cst_12 : f32 to vector<8x8xf32>
    %18 = arith.mulf %16, %17 : vector<8x8xf32>
    %19 = vector.broadcast %3 : vector<1x8xf32> to vector<8x8xf32>
    %20 = arith.addf %18, %19 : vector<8x8xf32>
    %cst_13 = arith.constant dense<0xFF800000> : vector<8xf32>
    %21 = vector.multi_reduction <maximumf>, %20, %cst_13 [1] : vector<8x8xf32> to vector<8xf32>
    %22 = vector.shape_cast %21 : vector<8xf32> to vector<8x1xf32>
    %23 = vector.broadcast %22 : vector<8x1xf32> to vector<8x8xf32>
    %24 = arith.subf %20, %23 : vector<8x8xf32>
    %25 = math.exp %24 : vector<8x8xf32>
    %cst_14 = arith.constant dense<0.000000e+00> : vector<8xf32>
    %26 = vector.multi_reduction <add>, %25, %cst_14 [1] : vector<8x8xf32> to vector<8xf32>
    %27 = vector.shape_cast %26 : vector<8xf32> to vector<8x1xf32>
    %28 = tpu.reciprocal %27 {approx = true} : vector<8x1xf32> -> vector<8x1xf32>
    %29 = vector.broadcast %28 : vector<8x1xf32> to vector<8x8xf32>
    %30 = arith.mulf %25, %29 : vector<8x8xf32>
    %31 = arith.truncf %30 : vector<8x8xf32> to vector<8x8xbf16>
    %32 = arith.truncf %13 : vector<8x16xf32> to vector<8x16xbf16>
    %cst_15 = arith.constant dense<0.000000e+00> : vector<8x16xf32>
    %33 = tpu.matmul %31, %32, %cst_15 {dimension_numbers = #tpu.dot_dimension_numbers<[1], [0], [0], [1], [0, 0, 1, 1], [], []>} : vector<8x8xbf16>, vector<8x16xbf16>, vector<8x16xf32> -> vector<8x16xf32>
    %34 = arith.truncf %33 : vector<8x16xf32> to vector<8x16xbf16>
    %35 = vector.extract_strided_slice %10 {offsets = [0, 0], sizes = [16, 32], strides = [1, 1]} : vector<32x32xbf16> to vector<16x32xbf16>
    %cst_16 = arith.constant dense<0.000000e+00> : vector<8x32xf32>
    %36 = tpu.matmul %34, %35, %cst_16 {dimension_numbers = #tpu.dot_dimension_numbers<[1], [0], [0], [1], [0, 0, 1, 1], [], []>} : vector<8x16xbf16>, vector<16x32xbf16>, vector<8x32xf32> -> vector<8x32xf32>
    %37 = vector.extract_strided_slice %9 {offsets = [0, 16], sizes = [8, 16], strides = [1, 1]} : vector<8x96xf32> to vector<8x16xf32>
    %38 = vector.extract_strided_slice %9 {offsets = [0, 48], sizes = [8, 16], strides = [1, 1]} : vector<8x96xf32> to vector<8x16xf32>
    %39 = vector.extract_strided_slice %9 {offsets = [0, 80], sizes = [8, 16], strides = [1, 1]} : vector<8x96xf32> to vector<8x16xf32>
    %40 = arith.truncf %37 : vector<8x16xf32> to vector<8x16xbf16>
    %41 = arith.truncf %38 : vector<8x16xf32> to vector<8x16xbf16>
    %cst_17 = arith.constant dense<0.000000e+00> : vector<8x8xf32>
    %42 = tpu.matmul %40, %41, %cst_17 {dimension_numbers = #tpu.dot_dimension_numbers<[1], [1], [0], [0], [0, 0, 1, 0], [], []>} : vector<8x16xbf16>, vector<8x16xbf16>, vector<8x8xf32> -> vector<8x8xf32>
    %cst_18 = arith.constant 2.500000e-01 : f32
    %43 = vector.broadcast %cst_18 : f32 to vector<8x8xf32>
    %44 = arith.mulf %42, %43 : vector<8x8xf32>
    %45 = vector.broadcast %3 : vector<1x8xf32> to vector<8x8xf32>
    %46 = arith.addf %44, %45 : vector<8x8xf32>
    %cst_19 = arith.constant dense<0xFF800000> : vector<8xf32>
    %47 = vector.multi_reduction <maximumf>, %46, %cst_19 [1] : vector<8x8xf32> to vector<8xf32>
    %48 = vector.shape_cast %47 : vector<8xf32> to vector<8x1xf32>
    %49 = vector.broadcast %48 : vector<8x1xf32> to vector<8x8xf32>
    %50 = arith.subf %46, %49 : vector<8x8xf32>
    %51 = math.exp %50 : vector<8x8xf32>
    %cst_20 = arith.constant dense<0.000000e+00> : vector<8xf32>
    %52 = vector.multi_reduction <add>, %51, %cst_20 [1] : vector<8x8xf32> to vector<8xf32>
    %53 = vector.shape_cast %52 : vector<8xf32> to vector<8x1xf32>
    %54 = tpu.reciprocal %53 {approx = true} : vector<8x1xf32> -> vector<8x1xf32>
    %55 = vector.broadcast %54 : vector<8x1xf32> to vector<8x8xf32>
    %56 = arith.mulf %51, %55 : vector<8x8xf32>
    %57 = arith.truncf %56 : vector<8x8xf32> to vector<8x8xbf16>
    %58 = arith.truncf %39 : vector<8x16xf32> to vector<8x16xbf16>
    %cst_21 = arith.constant dense<0.000000e+00> : vector<8x16xf32>
    %59 = tpu.matmul %57, %58, %cst_21 {dimension_numbers = #tpu.dot_dimension_numbers<[1], [0], [0], [1], [0, 0, 1, 1], [], []>} : vector<8x8xbf16>, vector<8x16xbf16>, vector<8x16xf32> -> vector<8x16xf32>
    %60 = arith.truncf %59 : vector<8x16xf32> to vector<8x16xbf16>
    %61 = vector.extract_strided_slice %10 {offsets = [16, 0], sizes = [16, 32], strides = [1, 1]} : vector<32x32xbf16> to vector<16x32xbf16>
    %cst_22 = arith.constant dense<0.000000e+00> : vector<8x32xf32>
    %62 = tpu.matmul %60, %61, %cst_22 {dimension_numbers = #tpu.dot_dimension_numbers<[1], [0], [0], [1], [0, 0, 1, 1], [], []>} : vector<8x16xbf16>, vector<16x32xbf16>, vector<8x32xf32> -> vector<8x32xf32>
    %63 = arith.addf %36, %62 : vector<8x32xf32>
    %c0_23 = arith.constant 0 : index
    %c0_24 = arith.constant 0 : index
    %64 = vector.load %arg6[%c0_23, %c0_24] : memref<1x32xf32, #tpu.memory_space<vmem>>, vector<1x32xf32>
    %65 = vector.broadcast %64 : vector<1x32xf32> to vector<8x32xf32>
    %66 = arith.addf %63, %65 : vector<8x32xf32>
    %67 = arith.addf %66, %1 : vector<8x32xf32>
    %c0_25 = arith.constant 0 : index
    %c0_26 = arith.constant 0 : index
    %68 = vector.load %arg7[%c0_25, %c0_26] : memref<1x32xf32, #tpu.memory_space<vmem>>, vector<1x32xf32>
    %c0_27 = arith.constant 0 : index
    %c0_28 = arith.constant 0 : index
    %69 = vector.load %arg8[%c0_27, %c0_28] : memref<1x32xf32, #tpu.memory_space<vmem>>, vector<1x32xf32>
    %cst_29 = arith.constant dense<0.000000e+00> : vector<8xf32>
    %70 = vector.multi_reduction <add>, %67, %cst_29 [1] : vector<8x32xf32> to vector<8xf32>
    %71 = vector.shape_cast %70 : vector<8xf32> to vector<8x1xf32>
    %cst_30 = arith.constant 3.200000e+01 : f32
    %72 = vector.broadcast %cst_30 : f32 to vector<8x1xf32>
    %73 = arith.divf %71, %72 : vector<8x1xf32>
    %74 = vector.broadcast %73 : vector<8x1xf32> to vector<8x32xf32>
    %75 = arith.subf %67, %74 : vector<8x32xf32>
    %76 = arith.mulf %75, %75 : vector<8x32xf32>
    %cst_31 = arith.constant dense<0.000000e+00> : vector<8xf32>
    %77 = vector.multi_reduction <add>, %76, %cst_31 [1] : vector<8x32xf32> to vector<8xf32>
    %78 = vector.shape_cast %77 : vector<8xf32> to vector<8x1xf32>
    %cst_32 = arith.constant 3.200000e+01 : f32
    %79 = vector.broadcast %cst_32 : f32 to vector<8x1xf32>
    %80 = arith.divf %78, %79 : vector<8x1xf32>
    %81 = vector.broadcast %73 : vector<8x1xf32> to vector<8x32xf32>
    %82 = arith.subf %67, %81 : vector<8x32xf32>
    %cst_33 = arith.constant 9.99999996E-13 : f32
    %83 = vector.broadcast %cst_33 : f32 to vector<8x1xf32>
    %84 = arith.addf %80, %83 : vector<8x1xf32>
    %85 = math.rsqrt %84 : vector<8x1xf32>
    %86 = vector.broadcast %85 : vector<8x1xf32> to vector<8x32xf32>
    %87 = arith.mulf %82, %86 : vector<8x32xf32>
    %88 = vector.broadcast %68 : vector<1x32xf32> to vector<8x32xf32>
    %89 = arith.mulf %87, %88 : vector<8x32xf32>
    %90 = vector.broadcast %69 : vector<1x32xf32> to vector<8x32xf32>
    %91 = arith.addf %89, %90 : vector<8x32xf32>
    %92 = arith.truncf %91 : vector<8x32xf32> to vector<8x32xbf16>
    %c0_34 = arith.constant 0 : index
    %c0_35 = arith.constant 0 : index
    %93 = vector.load %arg9[%c0_34, %c0_35] : memref<32x64xbf16, #tpu.memory_space<vmem>>, vector<32x64xbf16>
    %cst_36 = arith.constant dense<0.000000e+00> : vector<8x64xf32>
    %94 = tpu.matmul %92, %93, %cst_36 {dimension_numbers = #tpu.dot_dimension_numbers<[1], [0], [0], [1], [0, 0, 1, 1], [], []>} : vector<8x32xbf16>, vector<32x64xbf16>, vector<8x64xf32> -> vector<8x64xf32>
    %c0_37 = arith.constant 0 : index
    %c0_38 = arith.constant 0 : index
    %95 = vector.load %arg10[%c0_37, %c0_38] : memref<1x64xf32, #tpu.memory_space<vmem>>, vector<1x64xf32>
    %96 = vector.broadcast %95 : vector<1x64xf32> to vector<8x64xf32>
    %97 = arith.addf %94, %96 : vector<8x64xf32>
    %98 = arith.mulf %97, %97 : vector<8x64xf32>
    %99 = arith.mulf %97, %98 : vector<8x64xf32>
    %cst_39 = arith.constant 4.471500e-02 : f32
    %100 = vector.broadcast %cst_39 : f32 to vector<8x64xf32>
    %101 = arith.mulf %100, %99 : vector<8x64xf32>
    %102 = arith.addf %97, %101 : vector<8x64xf32>
    %cst_40 = arith.constant 0.797884583 : f32
    %103 = vector.broadcast %cst_40 : f32 to vector<8x64xf32>
    %104 = arith.mulf %103, %102 : vector<8x64xf32>
    %105 = math.tanh %104 : vector<8x64xf32>
    %cst_41 = arith.constant 1.000000e+00 : f32
    %106 = vector.broadcast %cst_41 : f32 to vector<8x64xf32>
    %107 = arith.addf %106, %105 : vector<8x64xf32>
    %cst_42 = arith.constant 5.000000e-01 : f32
    %108 = vector.broadcast %cst_42 : f32 to vector<8x64xf32>
    %109 = arith.mulf %108, %107 : vector<8x64xf32>
    %110 = arith.mulf %97, %109 : vector<8x64xf32>
    %111 = arith.truncf %110 : vector<8x64xf32> to vector<8x64xbf16>
    %c0_43 = arith.constant 0 : index
    %c0_44 = arith.constant 0 : index
    %112 = vector.load %arg11[%c0_43, %c0_44] : memref<64x32xbf16, #tpu.memory_space<vmem>>, vector<64x32xbf16>
    %cst_45 = arith.constant dense<0.000000e+00> : vector<8x32xf32>
    %113 = tpu.matmul %111, %112, %cst_45 {dimension_numbers = #tpu.dot_dimension_numbers<[1], [0], [0], [1], [0, 0, 1, 1], [], []>} : vector<8x64xbf16>, vector<64x32xbf16>, vector<8x32xf32> -> vector<8x32xf32>
    %c0_46 = arith.constant 0 : index
    %c0_47 = arith.constant 0 : index
    %114 = vector.load %arg12[%c0_46, %c0_47] : memref<1x32xf32, #tpu.memory_space<vmem>>, vector<1x32xf32>
    %115 = vector.broadcast %114 : vector<1x32xf32> to vector<8x32xf32>
    %116 = arith.addf %113, %115 : vector<8x32xf32>
    %117 = arith.addf %116, %91 : vector<8x32xf32>
    %c0_48 = arith.constant 0 : index
    %c0_49 = arith.constant 0 : index
    %118 = vector.load %arg13[%c0_48, %c0_49] : memref<1x32xf32, #tpu.memory_space<vmem>>, vector<1x32xf32>
    %c0_50 = arith.constant 0 : index
    %c0_51 = arith.constant 0 : index
    %119 = vector.load %arg14[%c0_50, %c0_51] : memref<1x32xf32, #tpu.memory_space<vmem>>, vector<1x32xf32>
    %cst_52 = arith.constant dense<0.000000e+00> : vector<8xf32>
    %120 = vector.multi_reduction <add>, %117, %cst_52 [1] : vector<8x32xf32> to vector<8xf32>
    %121 = vector.shape_cast %120 : vector<8xf32> to vector<8x1xf32>
    %cst_53 = arith.constant 3.200000e+01 : f32
    %122 = vector.broadcast %cst_53 : f32 to vector<8x1xf32>
    %123 = arith.divf %121, %122 : vector<8x1xf32>
    %124 = vector.broadcast %123 : vector<8x1xf32> to vector<8x32xf32>
    %125 = arith.subf %117, %124 : vector<8x32xf32>
    %126 = arith.mulf %125, %125 : vector<8x32xf32>
    %cst_54 = arith.constant dense<0.000000e+00> : vector<8xf32>
    %127 = vector.multi_reduction <add>, %126, %cst_54 [1] : vector<8x32xf32> to vector<8xf32>
    %128 = vector.shape_cast %127 : vector<8xf32> to vector<8x1xf32>
    %cst_55 = arith.constant 3.200000e+01 : f32
    %129 = vector.broadcast %cst_55 : f32 to vector<8x1xf32>
    %130 = arith.divf %128, %129 : vector<8x1xf32>
    %131 = vector.broadcast %123 : vector<8x1xf32> to vector<8x32xf32>
    %132 = arith.subf %117, %131 : vector<8x32xf32>
    %cst_56 = arith.constant 9.99999996E-13 : f32
    %133 = vector.broadcast %cst_56 : f32 to vector<8x1xf32>
    %134 = arith.addf %130, %133 : vector<8x1xf32>
    %135 = math.rsqrt %134 : vector<8x1xf32>
    %136 = vector.broadcast %135 : vector<8x1xf32> to vector<8x32xf32>
    %137 = arith.mulf %132, %136 : vector<8x32xf32>
    %138 = vector.broadcast %118 : vector<1x32xf32> to vector<8x32xf32>
    %139 = arith.mulf %137, %138 : vector<8x32xf32>
    %140 = vector.broadcast %119 : vector<1x32xf32> to vector<8x32xf32>
    %141 = arith.addf %139, %140 : vector<8x32xf32>
    %c0_57 = arith.constant 0 : index
    %c0_58 = arith.constant 0 : index
    %c0_59 = arith.constant 0 : index
    %142 = vector.load %arg15[%c0_57, %c0_58, %c0_59] : memref<1x8x32xf32, #tpu.memory_space<vmem>>, vector<1x8x32xf32>
    %143 = vector.shape_cast %142 : vector<1x8x32xf32> to vector<8x32xf32>
    %144 = vector.shape_cast %141 : vector<8x32xf32> to vector<1x8x32xf32>
    tpu.vector_store %arg15[%c0_57, %c0_58, %c0_59], %144 {strides = array<i32>} : memref<1x8x32xf32, #tpu.memory_space<vmem>>, vector<1x8x32xf32>,
    return
  }
  func.func @transform_0(%arg0: i32) -> (i32, i32, i32) {
    %c0_i32 = arith.constant 0 : i32
    %c0_i32_0 = arith.constant 0 : i32
    %c0_i32_1 = arith.constant 0 : i32
    return %arg0, %c0_i32, %c0_i32_0 : i32, i32, i32
  }
  func.func @transform_1(%arg0: i32) -> (i32, i32, i32) {
    %c0_i32 = arith.constant 0 : i32
    %c0_i32_0 = arith.constant 0 : i32
    %c0_i32_1 = arith.constant 0 : i32
    return %arg0, %c0_i32, %c0_i32_0 : i32, i32, i32
  }
  func.func @transform_2(%arg0: i32) -> (i32, i32) {
    %c0_i32 = arith.constant 0 : i32
    %c0_i32_0 = arith.constant 0 : i32
    %c0_i32_1 = arith.constant 0 : i32
    return %c0_i32, %c0_i32_0 : i32, i32
  }
  func.func @transform_3(%arg0: i32) -> (i32, i32) {
    %c0_i32 = arith.constant 0 : i32
    %c0_i32_0 = arith.constant 0 : i32
    %c0_i32_1 = arith.constant 0 : i32
    return %c0_i32, %c0_i32_0 : i32, i32
  }
  func.func @transform_4(%arg0: i32) -> (i32, i32) {
    %c0_i32 = arith.constant 0 : i32
    %c0_i32_0 = arith.constant 0 : i32
    %c0_i32_1 = arith.constant 0 : i32
    return %c0_i32, %c0_i32_0 : i32, i32
  }
  func.func @transform_5(%arg0: i32) -> (i32, i32) {
    %c0_i32 = arith.constant 0 : i32
    %c0_i32_0 = arith.constant 0 : i32
    %c0_i32_1 = arith.constant 0 : i32
    return %c0_i32, %c0_i32_0 : i32, i32
  }
  func.func @transform_6(%arg0: i32) -> (i32, i32) {
    %c0_i32 = arith.constant 0 : i32
    %c0_i32_0 = arith.constant 0 : i32
    %c0_i32_1 = arith.constant 0 : i32
    return %c0_i32, %c0_i32_0 : i32, i32
  }
  func.func @transform_7(%arg0: i32) -> (i32, i32) {
    %c0_i32 = arith.constant 0 : i32
    %c0_i32_0 = arith.constant 0 : i32
    %c0_i32_1 = arith.constant 0 : i32
    return %c0_i32, %c0_i32_0 : i32, i32
  }
  func.func @transform_8(%arg0: i32) -> (i32, i32) {
    %c0_i32 = arith.constant 0 : i32
    %c0_i32_0 = arith.constant 0 : i32
    %c0_i32_1 = arith.constant 0 : i32
    return %c0_i32, %c0_i32_0 : i32, i32
  }
  func.func @transform_9(%arg0: i32) -> (i32, i32) {
    %c0_i32 = arith.constant 0 : i32
    %c0_i32_0 = arith.constant 0 : i32
    %c0_i32_1 = arith.constant 0 : i32
    return %c0_i32, %c0_i32_0 : i32, i32
  }
  func.func @transform_10(%arg0: i32) -> (i32, i32) {
    %c0_i32 = arith.constant 0 : i32
    %c0_i32_0 = arith.constant 0 : i32
    %c0_i32_1 = arith.constant 0 : i32
    return %c0_i32, %c0_i32_0 : i32, i32
  }
  func.func @transform_11(%arg0: i32) -> (i32, i32) {
    %c0_i32 = arith.constant 0 : i32
    %c0_i32_0 = arith.constant 0 : i32
    %c0_i32_1 = arith.constant 0 : i32
    return %c0_i32, %c0_i32_0 : i32, i32
  }
  func.func @transform_12(%arg0: i32) -> (i32, i32) {
    %c0_i32 = arith.constant 0 : i32
    %c0_i32_0 = arith.constant 0 : i32
    %c0_i32_1 = arith.constant 0 : i32
    return %c0_i32, %c0_i32_0 : i32, i32
  }
  func.func @transform_13(%arg0: i32) -> (i32, i32) {
    %c0_i32 = arith.constant 0 : i32
    %c0_i32_0 = arith.constant 0 : i32
    %c0_i32_1 = arith.constant 0 : i32
    return %c0_i32, %c0_i32_0 : i32, i32
  }
  func.func @transform_14(%arg0: i32) -> (i32, i32, i32) {
    %c0_i32 = arith.constant 0 : i32
    %c0_i32_0 = arith.constant 0 : i32
    %c0_i32_1 = arith.constant 0 : i32
    return %arg0, %c0_i32, %c0_i32_0 : i32, i32, i32
  }
}

module attributes {stable_mosaic.version = 11 : i64} {
  func.func @_wc_mean_kernel(%arg0: i32, %arg1: memref<6x4xi32, #tpu.memory_space<vmem>>, %arg2: memref<6x4x32xf32, #tpu.memory_space<vmem>>, %arg3: memref<6x32xf32, #tpu.memory_space<vmem>>) attributes {dimension_semantics = [#tpu.dimension_semantics<arbitrary>], iteration_bounds = array<i64: 1>, scalar_prefetch = 0 : i64, scratch_operands = 0 : i64, tpu.core_type = #tpu.core_type<tc>, window_params = [{pipeline_mode = #tpu.pipeline_mode<synchronous>, transform_indices = @transform_0, window_bounds = array<i64: 6, 4>}, {pipeline_mode = #tpu.pipeline_mode<synchronous>, transform_indices = @transform_1, window_bounds = array<i64: 6, 4, 32>}, {pipeline_mode = #tpu.pipeline_mode<synchronous>, transform_indices = @transform_2, window_bounds = array<i64: 6, 32>}]} {
    %c0 = arith.constant 0 : index
    %c0_0 = arith.constant 0 : index
    %0 = vector.load %arg1[%c0, %c0_0] : memref<6x4xi32, #tpu.memory_space<vmem>>, vector<6x4xi32>
    %c0_1 = arith.constant 0 : index
    %c0_2 = arith.constant 0 : index
    %c0_3 = arith.constant 0 : index
    %1 = vector.load %arg2[%c0_1, %c0_2, %c0_3] : memref<6x4x32xf32, #tpu.memory_space<vmem>>, vector<6x4x32xf32>
    %c0_i32 = arith.constant 0 : i32
    %2 = vector.broadcast %c0_i32 : i32 to vector<6x4xi32>
    %3 = arith.cmpi ne, %0, %2 : vector<6x4xi32>
    %4 = arith.extui %3 : vector<6x4xi1> to vector<6x4xi32>
    %5 = arith.sitofp %4 : vector<6x4xi32> to vector<6x4xf32>
    %6 = vector.shape_cast %5 : vector<6x4xf32> to vector<6x4x1xf32>
    %7 = vector.broadcast %6 : vector<6x4x1xf32> to vector<6x4x32xf32>
    %8 = arith.mulf %1, %7 : vector<6x4x32xf32>
    %cst = arith.constant dense<0.000000e+00> : vector<6x32xf32>
    %9 = vector.multi_reduction <add>, %8, %cst [1] : vector<6x4x32xf32> to vector<6x32xf32>
    %cst_4 = arith.constant dense<0.000000e+00> : vector<6xf32>
    %10 = vector.multi_reduction <add>, %5, %cst_4 [1] : vector<6x4xf32> to vector<6xf32>
    %11 = vector.shape_cast %10 : vector<6xf32> to vector<6x1xf32>
    %cst_5 = arith.constant 9.99999993E-9 : f32
    %12 = vector.broadcast %cst_5 : f32 to vector<6x1xf32>
    %13 = arith.addf %11, %12 : vector<6x1xf32>
    %14 = tpu.reciprocal %13 {approx = true} : vector<6x1xf32> -> vector<6x1xf32>
    %15 = vector.broadcast %14 : vector<6x1xf32> to vector<6x32xf32>
    %16 = arith.mulf %9, %15 : vector<6x32xf32>
    %c0_6 = arith.constant 0 : index
    %c0_7 = arith.constant 0 : index
    %17 = vector.load %arg3[%c0_6, %c0_7] : memref<6x32xf32, #tpu.memory_space<vmem>>, vector<6x32xf32>
    tpu.vector_store %arg3[%c0_6, %c0_7], %16 {strides = array<i32>} : memref<6x32xf32, #tpu.memory_space<vmem>>, vector<6x32xf32>,
    return
  }
  func.func @transform_0(%arg0: i32) -> (i32, i32) {
    %c0_i32 = arith.constant 0 : i32
    %c0_i32_0 = arith.constant 0 : i32
    %c0_i32_1 = arith.constant 0 : i32
    return %c0_i32, %c0_i32_0 : i32, i32
  }
  func.func @transform_1(%arg0: i32) -> (i32, i32, i32) {
    %c0_i32 = arith.constant 0 : i32
    %c0_i32_0 = arith.constant 0 : i32
    %c0_i32_1 = arith.constant 0 : i32
    %c0_i32_2 = arith.constant 0 : i32
    return %c0_i32, %c0_i32_0, %c0_i32_1 : i32, i32, i32
  }
  func.func @transform_2(%arg0: i32) -> (i32, i32) {
    %c0_i32 = arith.constant 0 : i32
    %c0_i32_0 = arith.constant 0 : i32
    %c0_i32_1 = arith.constant 0 : i32
    return %c0_i32, %c0_i32_0 : i32, i32
  }
}

module attributes {stable_mosaic.version = 11 : i64} {
  func.func @_pooler_kernel(%arg0: i32, %arg1: memref<4x32xf32, #tpu.memory_space<vmem>>, %arg2: memref<32x32xbf16, #tpu.memory_space<vmem>>, %arg3: memref<1x32xf32, #tpu.memory_space<vmem>>, %arg4: memref<4x32xf32, #tpu.memory_space<vmem>>) attributes {dimension_semantics = [#tpu.dimension_semantics<arbitrary>], iteration_bounds = array<i64: 1>, scalar_prefetch = 0 : i64, scratch_operands = 0 : i64, tpu.core_type = #tpu.core_type<tc>, window_params = [{pipeline_mode = #tpu.pipeline_mode<synchronous>, transform_indices = @transform_0, window_bounds = array<i64: 4, 32>}, {pipeline_mode = #tpu.pipeline_mode<synchronous>, transform_indices = @transform_1, window_bounds = array<i64: 32, 32>}, {pipeline_mode = #tpu.pipeline_mode<synchronous>, transform_indices = @transform_2, window_bounds = array<i64: 1, 32>}, {pipeline_mode = #tpu.pipeline_mode<synchronous>, transform_indices = @transform_3, window_bounds = array<i64: 4, 32>}]} {
    %c0 = arith.constant 0 : index
    %c0_0 = arith.constant 0 : index
    %0 = vector.load %arg1[%c0, %c0_0] : memref<4x32xf32, #tpu.memory_space<vmem>>, vector<4x32xf32>
    %1 = arith.truncf %0 : vector<4x32xf32> to vector<4x32xbf16>
    %c0_1 = arith.constant 0 : index
    %c0_2 = arith.constant 0 : index
    %2 = vector.load %arg2[%c0_1, %c0_2] : memref<32x32xbf16, #tpu.memory_space<vmem>>, vector<32x32xbf16>
    %cst = arith.constant dense<0.000000e+00> : vector<4x32xf32>
    %3 = tpu.matmul %1, %2, %cst {dimension_numbers = #tpu.dot_dimension_numbers<[1], [0], [0], [1], [0, 0, 1, 1], [], []>} : vector<4x32xbf16>, vector<32x32xbf16>, vector<4x32xf32> -> vector<4x32xf32>
    %c0_3 = arith.constant 0 : index
    %c0_4 = arith.constant 0 : index
    %4 = vector.load %arg3[%c0_3, %c0_4] : memref<1x32xf32, #tpu.memory_space<vmem>>, vector<1x32xf32>
    %5 = vector.broadcast %4 : vector<1x32xf32> to vector<4x32xf32>
    %6 = arith.addf %3, %5 : vector<4x32xf32>
    %7 = math.tanh %6 : vector<4x32xf32>
    %c0_5 = arith.constant 0 : index
    %c0_6 = arith.constant 0 : index
    %8 = vector.load %arg4[%c0_5, %c0_6] : memref<4x32xf32, #tpu.memory_space<vmem>>, vector<4x32xf32>
    tpu.vector_store %arg4[%c0_5, %c0_6], %7 {strides = array<i32>} : memref<4x32xf32, #tpu.memory_space<vmem>>, vector<4x32xf32>,
    return
  }
  func.func @transform_0(%arg0: i32) -> (i32, i32) {
    %c0_i32 = arith.constant 0 : i32
    %c0_i32_0 = arith.constant 0 : i32
    %c0_i32_1 = arith.constant 0 : i32
    return %c0_i32, %c0_i32_0 : i32, i32
  }
  func.func @transform_1(%arg0: i32) -> (i32, i32) {
    %c0_i32 = arith.constant 0 : i32
    %c0_i32_0 = arith.constant 0 : i32
    %c0_i32_1 = arith.constant 0 : i32
    return %c0_i32, %c0_i32_0 : i32, i32
  }
  func.func @transform_2(%arg0: i32) -> (i32, i32) {
    %c0_i32 = arith.constant 0 : i32
    %c0_i32_0 = arith.constant 0 : i32
    %c0_i32_1 = arith.constant 0 : i32
    return %c0_i32, %c0_i32_0 : i32, i32
  }
  func.func @transform_3(%arg0: i32) -> (i32, i32) {
    %c0_i32 = arith.constant 0 : i32
    %c0_i32_0 = arith.constant 0 : i32
    %c0_i32_1 = arith.constant 0 : i32
    return %c0_i32, %c0_i32_0 : i32, i32
  }
}

</mosaic_0001>

<bundles_post_ra>
// kernel: bert_forward.5
= control target key start
LH: loop header
LB: loop body
LE: loop exit
PB: predicated region body
PF: predicated region fallthrough
CT: control target
= control target key end

     0   :  { %s376_s18 = smov 0   ;;  %s408_s0 = inlined_call_operand.vmem [shape: f32[4,8,32], index: 0, kind: input, shape index: {}]   ;;  %s409_s1 = inlined_call_operand.vmem [shape: f32[1,8,32], index: 1, kind: input, shape index: {}]   ;;  %s410_s2 = inlined_call_operand.vmem [shape: f32[1,1,32], index: 2, kind: input, shape index: {}]   ;;  %s411_s3 = inlined_call_operand.vmem [shape: f32[1,1,32], index: 3, kind: input, shape index: {}]   ;;  %s412_s4 = inlined_call_operand.vmem [shape: f32[1,1,32], index: 4, kind: input, shape index: {}]   ;;  %s413_s5 = inlined_call_operand.vmem [shape: f32[4,8,32], index: 5, kind: output, shape index: {}]  }
   0x1 LB: > { %s316_s19 = sadd.s32 4294967295, %s344_s18   ;;  %p320_p0 = scmp.ge.s32.totalorder %s344_s18, 1  ;;  %s344_s18 = sphi %s376_s18, %s15_s18  }
   0x2   : > { %p186_p1 = scmp.lt.s32.totalorder %s344_s18, 5 }
   0x4   : > { %p187_p2 = pnand %p320_p0, %p186_p1 }
   0x5   : > { %p212_p3 = scmp.lt.s32.totalorder (!%p187_p2), %s316_s19, 3  ;;  %v221_v0 = vld [vmem:[%s409_s1] sm:$0xff] (!%p187_p2)  ;;  %vm233_vm0 = vcmask (!%p187_p2), 261120  }
   0x6   : > { %190 = sbr.rel (%p187_p2) target bundleno = 335 (0x14f), region = 40  ;;  %v323_v2 = vld [vmem:[%s410_s2] ss:$0 sm:$0xff] (!%p187_p2) }
   0x7   : > { %v324_v15 = vld [vmem:[%s411_s3] ss:$0 sm:$0xff] (!%p187_p2) }
   0x8   : > { %v325_v17 = vld [vmem:[%s412_s4] ss:$0 sm:$0xff] (!%p187_p2) }
   0xd   : > { %s415_s19 = smov (!%p212_p3, %s316_s19), 3 }
   0xe   : > { %s321_s20 = sshll.u32 %s415_s19, 3 }
   0xf   : > { %s215_s25 = scalar_lea.vmem %s408_s0, %s321_s20  ;;  %s219_s9 = scalar_lea.vmem %s413_s5, %s321_s20 }
  0x10   : > { %v220_v1 = vld [vmem:[%s215_s25] sm:$0xff] }
  0x11   : > { %v222_v3 = vadd.f32 %v221_v0, %v220_v1 }
  0x13   : > { %v230_v4 = vadd.f32 %v323_v2, %v222_v3 }
  0x15   : > { %v234_v5 = vsel %vm233_vm0, %v230_v4, 0.0 }
  0x16   : > { %235 = vadd.xlane.f32.xlu0 %v234_v5 }
  0xa3   : > { %v236_v6 = vpop.xlane.xlu0 %235 }
  0xa4   : > { %v238_v7 = vmul.f32 0.03125, %v236_v6 }
  0xa6   : > { %v239_v8 = vsub.f32 %v230_v4, %v238_v7 }
  0xa8   : > { %v240_v9 = vmul.f32 %v239_v8, %v239_v8 }
  0xaa   : > { %v241_v10 = vsel %vm233_vm0, %v240_v9, 0.0 }
  0xab   : > { %242 = vadd.xlane.f32.xlu0 %v241_v10 }
 0x138   : > { %v243_v11 = vpop.xlane.xlu0 %242 }
 0x139   : > { %v244_v12 = vmul.f32 0.03125, %v243_v11 }
 0x13b   : > { %v245_v13 = vadd.f32 1e-12, %v244_v12 }
 0x13d   : > { %336 = vrsqrt.f32 %v245_v13 }
 0x147   : > { %v337_v14 = vpop.eup %336 }
 0x148   : > { %v247_v16 = vmul.f32 %v337_v14, %v239_v8 }
 0x14a   : > { %v254_v18 = vmul.f32 %v324_v15, %v247_v16 }
 0x14c   : > { %v261_v19 = vadd.f32 %v325_v17, %v254_v18 }
 0x14e   : > { %262 = vst.msk [vmem:[%s219_s9] sm:$0xff] %vm233_vm0, %v261_v19 }
 0x14f PF: > { %s15_s18 = sadd.s32 1, %s344_s18  }
 0x150   : > { %p12_p4 = scmp.ge.s32.totalorder %s15_s18, 6  }
 0x152   :  { %14 = sbr.rel (!%p12_p4) target bundleno = 1 (0x1), region = 70 }

// kernel: bert_forward.9
= control target key start
LH: loop header
LB: loop body
LE: loop exit
PB: predicated region body
PF: predicated region fallthrough
CT: control target
= control target key end

     0   :  { %v21_v0 = vlaneseq  ;;  %vm112_vm0 = vcmask 29696   ;;  %v168_v3 = vmov 0.0   ;;  %vm69_vm2 = vcmask 257024   ;;  %s214_s0 = inlined_call_operand.vmem [shape: s32[6,4], index: 0, kind: input, shape index: {}]   ;;  %s215_s1 = inlined_call_operand.vmem [shape: f32[6,4,32], index: 1, kind: input, shape index: {}]   ;;  %s216_s2 = inlined_call_operand.vmem [shape: f32[6,32], index: 2, kind: output, shape index: {}]  }
   0x1   :  { %v11_v1 = vld [vmem:[%s214_s0] sm:$0x3f]  ;;  %v14_v21 = vld [vmem:[%s215_s1 + $0x8] sm:$0xf]  ;;  %v15_v22 = vld [vmem:[%s215_s1 + $0xc] sm:$0xf] }
   0x2   :  { %vm18_vm1 = vcmp.ne.s32.totalorder %v11_v1, 0  ;;  %v22_v2 = vshrl.u32 %v21_v0, 7  ;;  %v16_v24 = vld [vmem:[%s215_s1 + $0x10] sm:$0xf]  ;;  %v17_v25 = vld [vmem:[%s215_s1 + $0x14] sm:$0xf] }
   0x3   :  { %v164_v4 = vsel %vm18_vm1, 1.0, %v168_v3  ;;  %v12_v27 = vld [vmem:[%s215_s1] sm:$0xf]  ;;  %v13_v47 = vld [vmem:[%s215_s1 + $0x4] sm:$0xf]  ;;  %vm143_vm3 = vcmask 1041409  }
   0x4   :  { %v113_v5 = vsel %vm112_vm0, %v164_v4, 0.0  ;;  %v37_v6 = vsub.s32 2, %v22_v2  ;;  %v23_v7 = vsub.s32 0, %v22_v2  ;;  %v44_v10 = vsub.s32 3, %v22_v2 }
   0x5   :  { %114 = vadd.xlane.f32.xlu0 %v113_v5  ;;  %v51_v12 = vsub.s32 4, %v22_v2  ;;  %v58_v14 = vsub.s32 5, %v22_v2  ;;  %v30_v15 = vsub.s32 1, %v22_v2  ;;  %vm146_vm4 = vcmask 1042434  }
   0x6   :  { %v38_v8 = vrot.slane %v164_v4, %v37_v6  ;;  %v24_v9 = vrot.slane %v164_v4, %v23_v7  ;;  %v45_v11 = vrot.slane %v164_v4, %v44_v10  ;;  %vm149_vm5 = vcmask 1043459  }
   0x7   :  { %v52_v13 = vrot.slane %v164_v4, %v51_v12  ;;  %v59_v16 = vrot.slane %v164_v4, %v58_v14  ;;  %v31_v17 = vrot.slane %v164_v4, %v30_v15  ;;  %vm152_vm6 = vcmask 1044484  }
   0x8   :  { %40 = vbcast.lane.b32.xlu1 %v38_v8, 256  ;;  %vm155_vm7 = vcmask 1045509   ;;  %vm158_vm8 = vcmask 259072  }
   0xc   :  { %26 = vbcast.lane.b32.xlu1 %v24_v9, 256 }
  0x10   :  { %47 = vbcast.lane.b32.xlu1 %v45_v11, 256 }
  0x14   :  { %54 = vbcast.lane.b32.xlu1 %v52_v13, 256 }
  0x18   :  { %61 = vbcast.lane.b32.xlu1 %v59_v16, 256 }
  0x1b   :  { %33 = vbcast.lane.b32.xlu0 %v31_v17, 256 }
  0x7a   :  { %v41_v18 = vpop.permute.xlu1 %40 }
  0x7b   :  { %v65_v26 = vmul.f32 %v41_v18, %v14_v21 }
  0x7d   :  { %v84_v33 = vsel %vm69_vm2, %v65_v26, 0.0 }
  0x7e   :  { %v27_v19 = vpop.permute.xlu1 %26  ;;  %v85_v37 = vrot.slane %v84_v33, 4 }
  0x7f   :  { %v63_v32 = vmul.f32 %v27_v19, %v12_v27 }
  0x80   :  { %v86_v45 = vadd.f32 %v85_v37, %v84_v33 }
  0x81   :  { %v70_v38 = vsel %vm69_vm2, %v63_v32, 0.0 }
  0x82   :  { %v48_v20 = vpop.permute.xlu1 %47  ;;  %v71_v43 = vrot.slane %v70_v38, 4  ;;  %v87_v53 = vrot.slane %v86_v45, 2 }
  0x83   :  { %v66_v28 = vmul.f32 %v48_v20, %v15_v22 }
  0x84   :  { %v72_v51 = vadd.f32 %v71_v43, %v70_v38  ;;  %v88_v60 = vadd.f32 %v87_v53, %v86_v45 }
  0x85   :  { %v91_v34 = vsel %vm69_vm2, %v66_v28, 0.0 }
  0x86   :  { %v55_v23 = vpop.permute.xlu1 %54  ;;  %v92_v39 = vrot.slane %v91_v34, 4  ;;  %v73_v59 = vrot.slane %v72_v51, 2  ;;  %v89_v4 = vrot.slane %v88_v60, 1 }
  0x87   :  { %v67_v30 = vmul.f32 %v55_v23, %v16_v24 }
  0x88   :  { %v93_v46 = vadd.f32 %v92_v39, %v91_v34  ;;  %v74_v3 = vadd.f32 %v73_v59, %v72_v51  ;;  %v90_v13 = vadd.f32 %v89_v4, %v88_v60 }
  0x89   :  { %v98_v36 = vsel %vm69_vm2, %v67_v30, 0.0 }
  0x8a   :  { %v62_v29 = vpop.permute.xlu1 %61  ;;  %v99_v41 = vrot.slane %v98_v36, 4  ;;  %v94_v54 = vrot.slane %v93_v46, 2  ;;  %v75_v10 = vrot.slane %v74_v3, 1 }
  0x8b   :  { %v68_v31 = vmul.f32 %v62_v29, %v17_v25 }
  0x8c   :  { %v100_v49 = vadd.f32 %v99_v41, %v98_v36  ;;  %v95_v61 = vadd.f32 %v94_v54, %v93_v46  ;;  %v76_v22 = vadd.f32 %v75_v10, %v74_v3 }
  0x8d   :  { %v105_v35 = vsel %vm69_vm2, %v68_v31, 0.0 }
  0x8e   :  { %v106_v40 = vrot.slane %v105_v35, 4  ;;  %v101_v57 = vrot.slane %v100_v49, 2  ;;  %v96_v5 = vrot.slane %v95_v61, 1 }
  0x90   :  { %v107_v48 = vadd.f32 %v106_v40, %v105_v35  ;;  %v102_v0 = vadd.f32 %v101_v57, %v100_v49  ;;  %v97_v14 = vadd.f32 %v96_v5, %v95_v61 }
  0x92   :  { %v115_v42 = vpop.xlane.xlu0 %114  ;;  %v108_v55 = vrot.slane %v107_v48, 2  ;;  %v103_v8 = vrot.slane %v102_v0, 1 }
  0x93   :  { %v116_v44 = vadd.f32 1e-08, %v115_v42 }
  0x94   :  { %v109_v63 = vadd.f32 %v108_v55, %v107_v48  ;;  %v104_v20 = vadd.f32 %v103_v8, %v102_v0 }
  0x95   :  { %166 = vrcp.f32 %v116_v44 }
  0x96   :  { %v34_v50 = vpop.permute.xlu0 %33  ;;  %v110_v6 = vrot.slane %v109_v63, 1 }
  0x97   :  { %v64_v52 = vmul.f32 %v34_v50, %v13_v47 }
  0x98   :  { %v111_v17 = vadd.f32 %v110_v6, %v109_v63 }
  0x99   :  { %v77_v56 = vsel %vm69_vm2, %v64_v52, 0.0 }
  0x9a   :  { %v78_v58 = vrot.slane %v77_v56, 4 }
  0x9c   :  { %v79_v62 = vadd.f32 %v78_v58, %v77_v56 }
  0x9e   :  { %v80_v1 = vrot.slane %v79_v62, 2 }
  0x9f   :  { %v167_v2 = vpop.eup %166 }
  0xa0   :  { %v81_v7 = vadd.f32 %v80_v1, %v79_v62  ;;  %v120_v9 = vrot.slane %v167_v2, 2  ;;  %v121_v11 = vrot.slane %v167_v2, 3  ;;  %v122_v15 = vrot.slane %v167_v2, 4 }
  0xa1   :  { %v123_v16 = vrot.slane %v167_v2, 5  ;;  %v119_v18 = vrot.slane %v167_v2, 1  ;;  %v130_v27 = vmul.f32 %v167_v2, %v76_v22 }
  0xa2   :  { %v82_v12 = vrot.slane %v81_v7, 1  ;;  %v132_v21 = vmul.f32 %v120_v9, %v90_v13  ;;  %v133_v24 = vmul.f32 %v121_v11, %v97_v14  ;;  %v134_v25 = vmul.f32 %v122_v15, %v104_v20 }
  0xa3   :  { %v135_v26 = vmul.f32 %v123_v16, %v111_v17 }
  0xa4   :  { %v83_v19 = vadd.f32 %v82_v12, %v81_v7  ;;  %v145_v29 = vrot.slane %v132_v21, 6  ;;  %v148_v31 = vrot.slane %v133_v24, 5  ;;  %v151_v33 = vrot.slane %v134_v25, 4 }
  0xa5   :  { %v154_v34 = vrot.slane %v135_v26, 3 }
  0xa6   :  { %v131_v23 = vmul.f32 %v119_v18, %v83_v19 }
  0xa8   :  { %v142_v28 = vrot.slane %v131_v23, 7 }
  0xaa   :  { %v144_v30 = vsel %vm143_vm3, %v142_v28, %v130_v27 }
  0xab   :  { %v147_v32 = vsel %vm146_vm4, %v145_v29, %v144_v30 }
  0xac   :  { %v150_v35 = vsel %vm149_vm5, %v148_v31, %v147_v32 }
  0xad   :  { %v153_v36 = vsel %vm152_vm6, %v151_v33, %v150_v35 }
  0xae   :  { %v156_v37 = vsel %vm155_vm7, %v154_v34, %v153_v36 }
  0xaf   :  { %159 = vst.msk [vmem:[%s216_s2] sm:$0x3f] %vm158_vm8, %v156_v37 }

// kernel: bert_forward.6
= control target key start
LH: loop header
LB: loop body
LE: loop exit
PB: predicated region body
PF: predicated region fallthrough
CT: control target
= control target key end

     0   :  { %s1430_s29 = smov 0   ;;  %s1568_s0 = inlined_call_operand.vmem [shape: f32[4,8,32], index: 0, kind: input, shape index: {}]   ;;  %s1569_s1 = inlined_call_operand.vmem [shape: f32[4,1,8], index: 1, kind: input, shape index: {}]   ;;  %s1570_s2 = inlined_call_operand.vmem [shape: bf16[32,96], index: 2, kind: input, shape index: {}]   ;;  %s1571_s3 = inlined_call_operand.vmem [shape: f32[1,96], index: 3, kind: input, shape index: {}]   ;;  %s1572_s4 = inlined_call_operand.vmem [shape: bf16[32,32], index: 4, kind: input, shape index: {}]   ;;  %s1573_s5 = inlined_call_operand.vmem [shape: f32[1,32], index: 5, kind: input, shape index: {}]   ;;  %s1574_s6 = inlined_call_operand.vmem [shape: f32[1,32], index: 6, kind: input, shape index: {}]   ;;  %s1575_s7 = inlined_call_operand.vmem [shape: f32[1,32], index: 7, kind: input, shape index: {}]   ;;  %s1576_s8 = inlined_call_operand.vmem [shape: bf16[32,64], index: 8, kind: input, shape index: {}]   ;;  %s1577_s9 = inlined_call_operand.vmem [shape: f32[1,64], index: 9, kind: input, shape index: {}]   ;;  %s1578_s10 = inlined_call_operand.vmem [shape: bf16[64,32], index: 10, kind: input, shape index: {}]   ;;  %s1579_s11 = inlined_call_operand.vmem [shape: f32[1,32], index: 11, kind: input, shape index: {}]   ;;  %s1580_s12 = inlined_call_operand.vmem [shape: f32[1,32], index: 12, kind: input, shape index: {}]   ;;  %s1581_s13 = inlined_call_operand.vmem [shape: f32[1,32], index: 13, kind: input, shape index: {}]   ;;  %s1582_s14 = inlined_call_operand.vmem [shape: f32[4,8,32], index: 14, kind: output, shape index: {}]  }
   0x1 LB: > { %s1177_s30 = sadd.s32 4294967295, %s1346_s29   ;;  %p1181_p0 = scmp.ge.s32.totalorder %s1346_s29, 1  ;;  %s1346_s29 = sphi %s1430_s29, %s24_s29  }
   0x2   : > { %p419_p1 = scmp.lt.s32.totalorder %s1346_s29, 5 }
   0x4   : > { %p420_p2 = pnand %p1181_p0, %p419_p1 }
   0x5   : > { %v1316_v0 = vld [vmem:[%s1570_s2] sm:$0xff] (!%p420_p2)   ;;  %v1348_v1 = vmov (!%p420_p2), 0.0   ;;  %v1317_v2 = vld [vmem:[%s1570_s2 + $0x8] sm:$0xff] (!%p420_p2)   ;;  %vm1349_vm0 = vmmov (!%p420_p2), 0   ;;  %p466_p3 = scmp.lt.s32.totalorder (!%p420_p2), %s1177_s30, 3  ;;  %vm504_vm1 = vcmask (!%p420_p2), 261120  }
   0x6   : > { %423 = sbr.rel (%p420_p2) target bundleno = 2418 (0x972), region = 76  ;;  %1237 = vmatprep.subr.bf16.mxu1 (!%p420_p2), %v1348_v1  ;;  %1251 = vmatprep.subr.bf16.mxu0 (!%p420_p2), %v1348_v1  ;;  %v1184_v5 = vld [vmem:[%s1571_s3] ss:$0 sm:$0xff] (!%p420_p2)  ;;  %s1350_s25 = smov (!%p420_p2), 112   ;;  %vm556_vm2 = vcmask (!%p420_p2), 130048   ;;  %vm611_vm3 = vcmask (!%p420_p2), 64512  }
   0x7   : > { %1238 = vmatpush3.bf16.msra.mxu1 (!%p420_p2), %v1316_v0  ;;  %1241 = vmatprep.mubr.msk.bf16.mxu1 (!%p420_p2), %vm1349_vm0, %v1348_v1  ;;  %s1351_s26 = smov (!%p420_p2), 96   ;;  %s1352_s27 = smov (!%p420_p2), 80   ;;  %vm629_vm4 = vcmask (!%p420_p2), 1043456   ;;  %v1318_v54 = vld [vmem:[%s1572_s4] sm:$0xff] (!%p420_p2)   ;;  %v1319_v55 = vld [vmem:[%s1572_s4 + $0x8] sm:$0xff] (!%p420_p2)   ;;  %vm1040_vm5 = vcmask (!%p420_p2), 523264  }
   0x8   : > { %1239 = vmatprep.subr.bf16.mxu1 (!%p420_p2), %v1348_v1  ;;  %1253 = vmatprep.mubr.msk.bf16.mxu0 (!%p420_p2), %vm1349_vm0, %v1348_v1  ;;  %s1353_s17 = smov (!%p420_p2), 64   ;;  %s1354_s18 = smov (!%p420_p2), 48  }
   0xb   : > { %1240 = vmatpush3.bf16.msra.mxu1 (!%p420_p2), %v1317_v2 }
   0xc   : > { %1245 = vmatprep.subr.bf16.mxu1 (!%p420_p2), %v1348_v1 }
   0xd   : > { %s1584_s30 = smov (!%p466_p3, %s1177_s30), 3 }
   0xe   : > { %s1182_s19 = sshll.u32 %s1584_s30, 3  ;;  %s472_s16 = scalar_lea.vmem %s1569_s1, %s1584_s30 }
   0xf   : > { %s469_s22 = scalar_lea.vmem %s1568_s0, %s1182_s19  ;;  %v1189_v18 = vld [vmem:[%s472_s16] ss:$0 sm:$0xff] }
  0x10   : > { %v1460_v3 = vld [vmem:[%s469_s22] sm:$0xff] }
  0x11   : > { %v480_v4 = vpack.c.bf16 %v1460_v3, %v1460_v3 }
  0x13   : > { %1242 = vmatmul.mubr.msk.bf16.vlgmr.msra.gmra.mrb[0].mxu1 %vm504_vm1, %v480_v4 }
  0x14   : > { %1247 = vmatprep.mubr.msk.bf16.mxu1 %vm1349_vm0, %v1348_v1 }
  0xe6   : > { %v542_v6 = vpop.f32.mrb[0].mxu1 }
  0xe7   : > { %v543_v7 = vadd.f32 %v1184_v5, %v542_v6  ;;  %v1243_v8 = vpop.f32.mrb[1].mxu1 }
  0xe8   : > { %v545_v9 = vpop.f32.mrb[2].mxu1 }
  0xe9   : > { %v552_v10 = vpack.c.bf16 %v543_v7, %v543_v7  ;;  %v1244_v11 = vpop.f32.mrb[3].mxu1  ;;  %v1197_v9 = vld [vmem:[%s1573_s5] ss:$0 sm:$0xff] }
  0xeb   : > { %674 = vrot.lane.b32.xlu1 %v552_v10, %s1350_s25  ;;  %554 = vrot.lane.b32.xlu0 %v552_v10, %s1351_s26  ;;  %s476_s26 = scalar_lea.vmem %s1582_s14, %s1182_s19 }
  0xef   : > { %676 = vrot.lane.b32.xlu0 %v552_v10, %s1352_s27 }
 0x15d   : > { %v555_v12 = vpop.permute.xlu0 %554  ;;  %v675_v16 = vpop.permute.xlu1 %674 }
 0x15e   : > { %v561_v13 = vsel %vm556_vm2, %v555_v12, 0 }
 0x15f   : > { %1246 = vmatpush3.bf16.xpose.msra.mxu1 %v561_v13 }
 0x160   : > { %1257 = vmatprep.subr.bf16.mxu1 %v1348_v1 }
 0x161   : > { %v677_v14 = vpop.permute.xlu0 %676 }
 0x162   : > { %v682_v15 = vsel %vm556_vm2, %v677_v14, 0 }
 0x166   : > { %1248 = vmatmul.mubr.msk.bf16.vlgmr.msra.gmra.mrb[4].mxu1 %vm556_vm2, %v552_v10 }
 0x167   : > { %1258 = vmatpush3.bf16.xpose.msra.mxu1 %v682_v15  ;;  %1259 = vmatprep.mubr.msk.bf16.mxu1 %vm1349_vm0, %v1348_v1 }
 0x168   : > { %1269 = vmatprep.subr.bf16.mxu1 %v1348_v1 }
 0x16e   : > { %1260 = vmatmul.mubr.msk.bf16.vlgmr.msra.gmra.mrb[8].mxu1 %vm556_vm2, %v675_v16 }
 0x16f   : > { %1271 = vmatprep.mubr.msk.bf16.mxu1 %vm1349_vm0, %v1348_v1  ;;  %1270 = vmatpush3.bf16.msra.mxu1 %v1319_v55 }
 0x170   : > { %1281 = vmatprep.subr.bf16.mxu1 %v1348_v1 }
 0x239   : > { %v597_v17 = vpop.f32.mrb[4].mxu1 }
 0x23a   : > { %v603_v19 = vmul.f32 0.25, %v597_v17  ;;  %v1249_v20 = vpop.f32.mrb[5].mxu1 }
 0x23b   : > { %v600_v21 = vpop.f32.mrb[6].mxu1 }
 0x23c   : > { %v1250_v22 = vpop.f32.mrb[7].mxu1  ;;  %v610_v23 = vadd.f32 %v1189_v18, %v603_v19 }
 0x23d   : > { %v1320_v22 = vld [vmem:[%s1576_s8] sm:$0xff]  }
 0x23e   : > { %v612_v24 = vsel %vm611_vm3, %v610_v23, -inf }
 0x23f   : > { %613 = vmax.xlane.f32.xlu1 %v612_v24 }
 0x241   : > { %v718_v25 = vpop.f32.mrb[8].mxu1 }
 0x242   : > { %v724_v26 = vmul.f32 0.25, %v718_v25  ;;  %v1261_v27 = vpop.f32.mrb[9].mxu1 }
 0x243   : > { %v721_v28 = vpop.f32.mrb[10].mxu1  ;;  %v1198_v27 = vld [vmem:[%s1574_s6] ss:$0 sm:$0xff] }
 0x244   : > { %v1262_v29 = vpop.f32.mrb[11].mxu1  ;;  %v725_v30 = vadd.f32 %v1189_v18, %v724_v26 }
 0x245   : > { %v1199_v29 = vld [vmem:[%s1575_s7] ss:$0 sm:$0xff] }
 0x246   : > { %v726_v31 = vsel %vm611_vm3, %v725_v30, -inf }
 0x247   : > { %727 = vmax.xlane.f32.xlu0 %v726_v31 }
 0x2cc   : > { %v614_v32 = vpop.xlane.xlu1 %613 }
 0x2cd   : > { %v615_v33 = vsub.f32 %v610_v23, %v614_v32  ;;  %v1321_v23 = vld [vmem:[%s1576_s8 + $0x8] sm:$0xff]  }
 0x2cf   : > { %v616_v34 = vmul.f32 1.442695, %v615_v33  ;;  %v1322_v33 = vld [vmem:[%s1578_s10] sm:$0xff]  }
 0x2d1   : > { %1326 = vpow2.f32 %v616_v34  ;;  %v1323_v34 = vld [vmem:[%s1578_s10 + $0x8] sm:$0xff]  }
 0x2d4   : > { %v728_v35 = vpop.xlane.xlu0 %727 }
 0x2d5   : > { %v729_v36 = vsub.f32 %v725_v30, %v728_v35  ;;  %v1324_v35 = vld [vmem:[%s1578_s10 + $0x10] sm:$0xff]  }
 0x2d7   : > { %v730_v37 = vmul.f32 1.442695, %v729_v36  ;;  %v1325_v36 = vld [vmem:[%s1578_s10 + $0x18] sm:$0xff]  }
 0x2d9   : > { %1328 = vpow2.f32 %v730_v37  ;;  %v1200_v37 = vld [vmem:[%s1577_s9] ss:$0 sm:$0xff] }
 0x2db   : > { %v1327_v38 = vpop.eup %1326 }
 0x2dc   : > { %v618_v39 = vsel %vm611_vm3, %v1327_v38, 0.0 }
 0x2dd   : > { %619 = vadd.xlane.f32.xlu0 %v618_v39 }
 0x2e3   : > { %v1329_v40 = vpop.eup %1328 }
 0x2e4   : > { %v732_v41 = vsel %vm611_vm3, %v1329_v40, 0.0 }
 0x2e5   : > { %733 = vadd.xlane.f32.xlu1 %v732_v41 }
 0x2f3   : > { %624 = vrot.lane.b32.xlu0 %v552_v10, %s1353_s17 }
 0x2f6   : > { %738 = vrot.lane.b32.xlu1 %v552_v10, %s1354_s18 }
 0x36a   : > { %v620_v42 = vpop.xlane.xlu0 %619 }
 0x36b   : > { %1330 = vrcp.f32 %v620_v42 }
 0x36e   : > { %v625_v43 = vpop.permute.xlu0 %624 }
 0x36f   : > { %v631_v44 = vsel %vm629_vm4, %v625_v43, 0 }
 0x370   : > { %1252 = vmatpush3.bf16.msra.mxu0 %v631_v44 }
 0x371   : > { %1263 = vmatprep.subr.bf16.mxu0 %v1348_v1 }
 0x372   : > { %v734_v45 = vpop.xlane.xlu1 %733 }
 0x373   : > { %1332 = vrcp.f32 %v734_v45 }
 0x375   : > { %v1331_v46 = vpop.eup %1330 }
 0x376   : > { %v622_v47 = vmul.f32 %v1331_v46, %v1327_v38  ;;  %v739_v48 = vpop.permute.xlu1 %738 }
 0x377   : > { %v744_v50 = vsel %vm629_vm4, %v739_v48, 0 }
 0x378   : > { %v623_v49 = vpack.c.bf16 %v622_v47, %v622_v47 }
 0x37a   : > { %1254 = vmatmul.mubr.msk.bf16.vlgmr.msra.gmra.mrb[0].mxu0 %vm611_vm3, %v623_v49 }
 0x37b   : > { %1264 = vmatpush3.bf16.msra.mxu0 %v744_v50  ;;  %1265 = vmatprep.mubr.msk.bf16.mxu0 %vm1349_vm0, %v1348_v1 }
 0x37c   : > { %1275 = vmatprep.subr.bf16.mxu0 %v1348_v1 }
 0x37d   : > { %v1333_v51 = vpop.eup %1332 }
 0x37e   : > { %v736_v52 = vmul.f32 %v1333_v51, %v1329_v40 }
 0x380   : > { %v737_v53 = vpack.c.bf16 %v736_v52, %v736_v52  ;;  %v1204_v52 = vld [vmem:[%s1579_s11] ss:$0 sm:$0xff] }
 0x382   : > { %1266 = vmatmul.mubr.msk.bf16.vlgmr.msra.gmra.mrb[4].mxu0 %vm611_vm3, %v737_v53 }
 0x383   : > { %1277 = vmatprep.mubr.msk.bf16.mxu0 %vm1349_vm0, %v1348_v1  ;;  %1276 = vmatpush3.bf16.msra.mxu0 %v1318_v54 }
 0x384   : > { %1289 = vmatprep.subr.bf16.mxu0 %v1348_v1 }
 0x44d   : > { %v667_v56 = vpop.f32.mrb[0].mxu0 }
 0x44e   : > { %v673_v57 = vpack.c.bf16 %v667_v56, %v667_v56  ;;  %v1255_v58 = vpop.f32.mrb[1].mxu0 }
 0x44f   : > { %v670_v59 = vpop.f32.mrb[2].mxu0 }
 0x450   : > { %v1256_v60 = vpop.f32.mrb[3].mxu0  ;;  %1278 = vmatmul.mubr.msk.bf16.vlgmr.msra.gmra.mrb[8].mxu0 %vm556_vm2, %v673_v57 }
 0x451   : > { %1297 = vmatprep.mubr.msk.bf16.mxu0 %vm1349_vm0, %v1348_v1  ;;  %1290 = vmatpush3.bf16.msra.mxu0 %v1322_v33 }
 0x452   : > { %1291 = vmatprep.subr.bf16.mxu0 %v1348_v1 }
 0x455   : > { %v780_v61 = vpop.f32.mrb[4].mxu0  ;;  %1292 = vmatpush3.bf16.msra.mxu0 %v1323_v34 }
 0x456   : > { %v786_v62 = vpack.c.bf16 %v780_v61, %v780_v61  ;;  %v1267_v63 = vpop.f32.mrb[5].mxu0  ;;  %1293 = vmatprep.subr.bf16.mxu0 %v1348_v1 }
 0x457   : > { %v783_v0 = vpop.f32.mrb[6].mxu0 }
 0x458   : > { %v1268_v2 = vpop.f32.mrb[7].mxu0  ;;  %1272 = vmatmul.mubr.msk.bf16.vlgmr.msra.gmra.mrb[12].mxu1 %vm556_vm2, %v786_v62 }
 0x459   : > { %1285 = vmatprep.mubr.msk.bf16.mxu1 %vm1349_vm0, %v1348_v1  ;;  %1282 = vmatpush3.bf16.msra.mxu1 %v1320_v22 }
 0x45a   : > { %1283 = vmatprep.subr.bf16.mxu1 %v1348_v1  ;;  %1294 = vmatpush3.bf16.msra.mxu0 %v1324_v35 }
 0x45b   : > { %1295 = vmatprep.subr.bf16.mxu0 %v1348_v1 }
 0x45d   : > { %1284 = vmatpush3.bf16.msra.mxu1 %v1321_v23 }
 0x45e   : > { %1296 = vmatpush3.bf16.msra.mxu0 %v1325_v36 }
 0x523   : > { %v879_v4 = vpop.f32.mrb[8].mxu0 }
 0x524   : > { %v1279_v5 = vpop.f32.mrb[9].mxu0 }
 0x525   : > { %v882_v6 = vpop.f32.mrb[10].mxu0 }
 0x526   : > { %v1280_v7 = vpop.f32.mrb[11].mxu0 }
 0x527   : > { %v1210_v7 = vld [vmem:[%s1580_s12] ss:$0 sm:$0xff] }
 0x52b   : > { %v830_v8 = vpop.f32.mrb[12].mxu1 }
 0x52c   : > { %v880_v10 = vadd.f32 %v879_v4, %v830_v8  ;;  %v1273_v11 = vpop.f32.mrb[13].mxu1 }
 0x52d   : > { %v833_v12 = vpop.f32.mrb[14].mxu1 }
 0x52e   : > { %v892_v13 = vadd.f32 %v1197_v9, %v880_v10  ;;  %v1274_v14 = vpop.f32.mrb[15].mxu1  ;;  %v1211_v9 = vld [vmem:[%s1581_s13] ss:$0 sm:$0xff] }
 0x530   : > { %v893_v15 = vadd.f32 %v892_v13, %v1460_v3 }
 0x532   : > { %v896_v16 = vsel %vm504_vm1, %v893_v15, 0.0 }
 0x533   : > { %897 = vadd.xlane.f32.xlu1 %v896_v16 }
 0x5c0   : > { %v898_v17 = vpop.xlane.xlu1 %897 }
 0x5c1   : > { %v900_v18 = vmul.f32 0.03125, %v898_v17 }
 0x5c3   : > { %v901_v19 = vsub.f32 %v893_v15, %v900_v18 }
 0x5c5   : > { %v902_v20 = vmul.f32 %v901_v19, %v901_v19 }
 0x5c7   : > { %v903_v21 = vsel %vm504_vm1, %v902_v20, 0.0 }
 0x5c8   : > { %904 = vadd.xlane.f32.xlu0 %v903_v21 }
 0x655   : > { %v905_v3 = vpop.xlane.xlu0 %904 }
 0x656   : > { %v906_v24 = vmul.f32 0.03125, %v905_v3 }
 0x658   : > { %v907_v25 = vadd.f32 1e-12, %v906_v24 }
 0x65a   : > { %1334 = vrsqrt.f32 %v907_v25 }
 0x664   : > { %v1335_v26 = vpop.eup %1334 }
 0x665   : > { %v909_v28 = vmul.f32 %v1335_v26, %v901_v19 }
 0x667   : > { %v916_v30 = vmul.f32 %v1198_v27, %v909_v28 }
 0x669   : > { %v923_v31 = vadd.f32 %v1199_v29, %v916_v30 }
 0x66b   : > { %v924_v32 = vpack.c.bf16 %v923_v31, %v923_v31 }
 0x66d   : > { %1286 = vmatmul.mubr.msk.bf16.vlgmr.msra.gmra.mrb[16].mxu1 %vm504_vm1, %v924_v32 }
 0x740   : > { %v985_v38 = vpop.f32.mrb[16].mxu1 }
 0x741   : > { %v986_v39 = vadd.f32 %v1200_v37, %v985_v38  ;;  %v1287_v40 = vpop.f32.mrb[17].mxu1 }
 0x742   : > { %v988_v41 = vpop.f32.mrb[18].mxu1 }
 0x743   : > { %v991_v42 = vmul.f32 %v986_v39, %v986_v39  ;;  %v1288_v43 = vpop.f32.mrb[19].mxu1 }
 0x745   : > { %v992_v44 = vmul.f32 %v991_v42, %v986_v39 }
 0x747   : > { %v993_v45 = vmul.f32 0.044715, %v992_v44 }
 0x749   : > { %v994_v46 = vadd.f32 %v993_v45, %v986_v39 }
 0x74b   : > { %v995_v47 = vmul.f32 0.7978846, %v994_v46 }
 0x74d   : > { %1336 = vtanh.f32 %v995_v47 }
 0x757   : > { %v1337_v1 = vpop.eup %1336 }
 0x758   : > { %v997_v48 = vadd.f32 1.0, %v1337_v1 }
 0x75a   : > { %v998_v49 = vmul.f32 0.5, %v997_v48 }
 0x75c   : > { %v999_v50 = vmul.f32 %v998_v49, %v986_v39 }
 0x75e   : > { %v1000_v51 = vpack.c.bf16 %v999_v50, %v999_v50 }
 0x760   : > { %1298 = vmatmul.mubr.msk.bf16.vlgmr.msra.gmra.mrb[12].mxu0 %vm1040_vm5, %v1000_v51 }
 0x833   : > { %v1078_v53 = vpop.f32.mrb[12].mxu0 }
 0x834   : > { %v1079_v54 = vadd.f32 %v1204_v52, %v1078_v53  ;;  %v1299_v55 = vpop.f32.mrb[13].mxu0 }
 0x835   : > { %v1081_v56 = vpop.f32.mrb[14].mxu0 }
 0x836   : > { %v1300_v57 = vpop.f32.mrb[15].mxu0  ;;  %v1084_v58 = vadd.f32 %v1079_v54, %v923_v31 }
 0x838   : > { %v1087_v59 = vsel %vm504_vm1, %v1084_v58, 0.0 }
 0x839   : > { %1088 = vadd.xlane.f32.xlu0 %v1087_v59 }
 0x8c6   : > { %v1089_v60 = vpop.xlane.xlu0 %1088 }
 0x8c7   : > { %v1090_v61 = vmul.f32 0.03125, %v1089_v60 }
 0x8c9   : > { %v1091_v62 = vsub.f32 %v1084_v58, %v1090_v61 }
 0x8cb   : > { %v1092_v63 = vmul.f32 %v1091_v62, %v1091_v62 }
 0x8cd   : > { %v1093_v0 = vsel %vm504_vm1, %v1092_v63, 0.0 }
 0x8ce   : > { %1094 = vadd.xlane.f32.xlu1 %v1093_v0 }
 0x95b   : > { %v1095_v2 = vpop.xlane.xlu1 %1094 }
 0x95c   : > { %v1096_v4 = vmul.f32 0.03125, %v1095_v2 }
 0x95e   : > { %v1097_v5 = vadd.f32 1e-12, %v1096_v4 }
 0x960   : > { %1338 = vrsqrt.f32 %v1097_v5 }
 0x96a   : > { %v1339_v6 = vpop.eup %1338 }
 0x96b   : > { %v1099_v8 = vmul.f32 %v1339_v6, %v1091_v62 }
 0x96d   : > { %v1106_v10 = vmul.f32 %v1210_v7, %v1099_v8 }
 0x96f   : > { %v1113_v11 = vadd.f32 %v1211_v9, %v1106_v10 }
 0x971   : > { %1114 = vst.msk [vmem:[%s476_s26] sm:$0xff] %vm504_vm1, %v1113_v11 }
 0x972 PF: > { %s24_s29 = sadd.s32 1, %s1346_s29  }
 0x973   : > { %p21_p4 = scmp.ge.s32.totalorder %s24_s29, 6  }
 0x975   :  { %23 = sbr.rel (!%p21_p4) target bundleno = 1 (0x1), region = 109 }

// kernel: bert_forward.8
= control target key start
LH: loop header
LB: loop body
LE: loop exit
PB: predicated region body
PF: predicated region fallthrough
CT: control target
= control target key end

     0   :  { %v148_v1 = vmov 0.0   ;;  %vm149_vm0 = vmmov 0   ;;  %s195_s0 = inlined_call_operand.vmem [shape: f32[4,32], index: 0, kind: input, shape index: {}]   ;;  %s196_s1 = inlined_call_operand.vmem [shape: bf16[32,32], index: 1, kind: input, shape index: {}]   ;;  %s197_s2 = inlined_call_operand.vmem [shape: f32[1,32], index: 2, kind: input, shape index: {}]   ;;  %s198_s3 = inlined_call_operand.hbm [shape: f32[4,32], index: 3, kind: output, shape index: {}]  }
   0x1   :  { %v120_v0 = vld [vmem:[%s196_s1] sm:$0xff]   ;;  %109 = vmatprep.subr.bf16.mxu0 %v148_v1  ;;  %v121_v2 = vld [vmem:[%s196_s1 + $0x8] sm:$0xff]   ;;  %113 = vmatprep.mubr.msk.bf16.mxu0 %vm149_vm0, %v148_v1 }
   0x2   :  { %110 = vmatpush3.bf16.msra.mxu0 %v120_v0  ;;  %v16_v3 = vld [vmem:[%s195_s0] sm:$0xf] }
   0x3   :  { %111 = vmatprep.subr.bf16.mxu0 %v148_v1 }
   0x4   :  { %8 = vsyncpa [#allocation3], 0  ;;  %v17_v4 = vpack.c.bf16 %v16_v3, %v16_v3  ;;  %vm41_vm1 = vcmask 261120   ;;  %v102_v5 = vld [vmem:[%s197_s2] ss:$0 sm:$0xff]  ;;  %s150_s1 = smov [#allocation2]  }
   0x5   :  { %s94_s20 = sshll.u32 %s150_s1, 4  ;;  %vm86_vm2 = vcmask 257024   ;;  %s95_s20 = int_to_ptr.vmem [resolvable:$true] %s94_s20 }
   0x6   :  { %112 = vmatpush3.bf16.msra.mxu0 %v121_v2  ;;  %s124_s0 = scalar_lea.vmem %s95_s20, 64  ;;  %p129_p1 = scmp.lt.s32.totalorder %s95_s20, %s95_s20 }
   0x7   :  { %p125_p0 = scmp.ne.s32.totalorder %s95_s20, %s124_s0  ;;  %p130_p2 = scmp.lt.s32.totalorder %s124_s0, %s124_s0 }
   0x9   :  { %114 = vmatmul.mubr.msk.bf16.vlgmr.msra.gmra.mrb[0].mxu0 %vm41_vm1, %v17_v4  ;;  %p131_p3 = por %p130_p2, %p129_p1 }
   0xb   :  { %p132_p4 = pnand %p131_p3, %p125_p0 }
  0xdc   :  { %v79_v6 = vpop.f32.mrb[0].mxu0 }
  0xdd   :  { %v80_v7 = vadd.f32 %v102_v5, %v79_v6  ;;  %v115_v8 = vpop.f32.mrb[1].mxu0 }
  0xde   :  { %v82_v9 = vpop.f32.mrb[2].mxu0 }
  0xdf   :  { %122 = vtanh.f32 %v80_v7  ;;  %v116_v10 = vpop.f32.mrb[3].mxu0 }
  0xe9   :  { %v123_v11 = vpop.eup %122 }
  0xea   :  { %87 = vst.msk [vmem:[#allocation2] sm:$0xf] %vm86_vm2, %v123_v11 }
  0xeb   :  { %135 = shalt.err (!%p132_p4)
}
  0xec   :  { %s136_s22 = scalar_lea.hbm %s198_s3, 64 }
  0xed   :  { %p137_p5 = scmp.ne.s32.totalorder %s198_s3, %s136_s22  ;;  %p140_p6 = scmp.lt.u32.totalorder %s136_s22, %s198_s3 }
  0xef   :  { %p142_p7 = pnand %p140_p6, %p137_p5 }
  0xf1   :  { %145 = shalt.err (!%p142_p7)
}
  0xf2   :  { %97 = dma.vmem_to_hbm [thread:$0]  %s95_s20, 64, %s198_s3, [#allocation3]  }
  0xf3   :  { %146 = dma.done.wait [#allocation3], 64  }
  0xf4   :  { %147 = vsyncadd [#allocation3], 4294967232 }
  0xf5   :  { %101 = vsyncpa [#allocation3], 1 }

</bundles_post_ra>
